<compile_context>
chip_gen: v5e
topology: v5e:2x2
jax: 0.10.0
libtpu: 0.0.40
codegen_flags: <defaults>
</compile_context>

<pallas_src>
import functools

import jax
import jax.numpy as jnp
from jax import lax
from jax.experimental import pallas as pl
from jax.experimental.pallas import tpu as pltpu


# --------------------------------- kernel ------------------------------------

def _fused_conv_bn_act_kernel(p_ref, w_ref, affine_ref, o_ref, *,
                              eps, neg_slope, inv_count):
    """Conv (as one matmul on pre-built patches) + BatchNorm(train) + LeakyReLU.

    p_ref:      (M, K*K*Cin) bf16   im2col patches for the WHOLE batch
    w_ref:      (K*K*Cin, Cout) bf16
    affine_ref: (2, Cout) f32       row 0 = gamma, row 1 = beta
    o_ref:      (M, Cout) bf16
    """
    # Conv for the whole batch: one MXU contraction, f32 accumulation.
    y = jnp.dot(p_ref[...], w_ref[...], preferred_element_type=jnp.float32)  # (M, Cout)

    # Exact training-mode BatchNorm stats over the whole batch (centered two-pass,
    # f32 — avoids E[y^2]-E[y]^2 cancellation).
    mean = jnp.sum(y, axis=0, keepdims=True) * inv_count                     # (1, Cout)
    c = y - mean
    var = jnp.sum(c * c, axis=0, keepdims=True) * inv_count                  # (1, Cout)

    scale = affine_ref[0:1, :] * lax.rsqrt(var + eps)                        # gamma / std
    z = c * scale + affine_ref[1:2, :]                                       # + beta
    o_ref[...] = jnp.maximum(z, neg_slope * z).astype(o_ref.dtype)           # LeakyReLU


# --------------------------------- wrapper -----------------------------------

def _noise_and_mask(key, shape, drop_p, training):
    # TODO(synk): torch.randn_like / nn.Dropout RNG streams cannot be reproduced
    # bit-for-bit; noise/dropout are drawn from jax.random (same distribution).
    kn, kd = jax.random.split(key)
    noise = jax.random.normal(kn, shape, jnp.float32)
    if training and drop_p > 0.0:
        keep = 1.0 - drop_p
        mask = jax.random.bernoulli(kd, keep, shape).astype(jnp.float32) / keep
    else:
        mask = jnp.ones(shape, jnp.float32)
    return noise, mask


@functools.partial(jax.jit, static_argnames=(
    "kernel", "stride", "upsample", "drop_p", "noise_std", "training",
    "eps", "neg_slope"))
def denoising_block(x_nchw, weight_oihw, gamma, beta, key, *, kernel, stride=1,
                    upsample=False, drop_p=0.2, noise_std=0.05, training=True,
                    eps=1e-5, neg_slope=0.2):
    """Pallas forward of DenoisingBlock. x_nchw: (N,Cin,H,W), weight: (Cout,Cin,K,K)."""
    N, Cin, H, W = x_nchw.shape
    Cout = weight_oihw.shape[0]
    K = kernel
    pad = (K - 1) // 2

    x = jnp.transpose(x_nchw, (0, 2, 3, 1)).astype(jnp.float32)          # -> NHWC
    if upsample:
        # F.interpolate(scale_factor=2, mode='bilinear', align_corners=False).
        # TODO(synk): bilinear upsample stays an XLA op in the wrapper (gather-style
        # resampling has no clean tile-local Pallas expression at these shapes).
        x = jax.image.resize(x, (N, 2 * H, 2 * W, Cin), method="linear")
        H, W = 2 * H, 2 * W

    # x = dropout(x + 0.05 * randn_like(x)) fused into ONE bf16 tensor (f32 math).
    noise, mask = _noise_and_mask(key, x.shape, drop_p, training)
    x = ((x + noise_std * noise) * mask).astype(jnp.bfloat16)

    x_p = jnp.pad(x, ((0, 0), (pad, pad), (pad, pad), (0, 0)))
    Hp, Wp = H + 2 * pad, W + 2 * pad
    Ho = (Hp - K) // stride + 1
    Wo = (Wp - K) // stride + 1
    M = N * Ho * Wo

    # im2col in the wrapper (XLA), so the kernel sees a lane-denser (M, K*K*Cin)
    # matrix and does no in-kernel concat/reshape relayouts. Handles stride here too.
    taps = []
    for dy in range(K):
        for dx in range(K):
            taps.append(x_p[:, dy:dy + (Ho - 1) * stride + 1:stride,
                            dx:dx + (Wo - 1) * stride + 1:stride, :])
    patches = jnp.concatenate(taps, axis=-1).reshape(M, K * K * Cin)      # bf16

    # (Cout,Cin,K,K) -> (K,K,Cin,Cout) -> (K*K*Cin, Cout), matching the im2col order.
    w = jnp.transpose(weight_oihw, (2, 3, 1, 0)).reshape(K * K * Cin, Cout)
    w = w.astype(jnp.bfloat16)

    # Pack BatchNorm affine params into a single small input.
    affine = jnp.stack([gamma.astype(jnp.float32), beta.astype(jnp.float32)], axis=0)

    # TODO(synk): BatchNorm running_mean/running_var are neither used nor updated —
    # this implements the training-mode forward normalization only.
    out = pl.pallas_call(
        functools.partial(_fused_conv_bn_act_kernel, eps=eps, neg_slope=neg_slope,
                          inv_count=1.0 / float(M)),
        out_shape=jax.ShapeDtypeStruct((M, Cout), jnp.bfloat16),
        grid_spec=pltpu.PrefetchScalarGridSpec(
            num_scalar_prefetch=0, grid=(1,),
            in_specs=[pl.BlockSpec((M, K * K * Cin), lambda i: (0, 0)),
                      pl.BlockSpec((K * K * Cin, Cout), lambda i: (0, 0)),
                      pl.BlockSpec((2, Cout), lambda i: (0, 0))],
            out_specs=pl.BlockSpec((M, Cout), lambda i: (0, 0))),
        compiler_params=pltpu.CompilerParams(
            dimension_semantics=("arbitrary",)),
    )(patches, w, affine)

    # Module interface is NCHW/f32. When chaining DenoisingBlocks, keep the bf16
    # (N, Ho, Wo, Cout) layout instead and skip this transpose/cast.
    out = out.reshape(N, Ho, Wo, Cout)
    return jnp.transpose(out, (0, 3, 1, 2)).astype(jnp.float32)


# ------------------------------ pure-JAX reference ----------------------------

def _reference(x_nchw, weight_oihw, gamma, beta, key, *, kernel, stride=1,
               upsample=False, drop_p=0.2, noise_std=0.05, training=True,
               eps=1e-5, neg_slope=0.2):
    """Pure-JAX reference using the same RNG draws and the same bf16 input
    quantization as the Pallas wrapper (isolates kernel numerics)."""
    N, Cin, H, W = x_nchw.shape
    K = kernel
    pad = (K - 1) // 2
    x = jnp.transpose(x_nchw, (0, 2, 3, 1)).astype(jnp.float32)
    if upsample:
        x = jax.image.resize(x, (N, 2 * H, 2 * W, Cin), method="linear")
    noise, mask = _noise_and_mask(key, x.shape, drop_p, training)
    x = ((x + noise_std * noise) * mask).astype(jnp.bfloat16).astype(jnp.float32)
    w = jnp.transpose(weight_oihw, (2, 3, 1, 0)).astype(jnp.bfloat16).astype(jnp.float32)
    y = lax.conv_general_dilated(x, w, (stride, stride), [(pad, pad), (pad, pad)],
                                 dimension_numbers=("NHWC", "HWIO", "NHWC"),
                                 precision=lax.Precision.HIGHEST)
    mean = jnp.mean(y, axis=(0, 1, 2), keepdims=True)
    var = jnp.mean(jnp.square(y - mean), axis=(0, 1, 2), keepdims=True)
    y = (y - mean) * lax.rsqrt(var + eps) * gamma.reshape(1, 1, 1, -1) \
        + beta.reshape(1, 1, 1, -1)
    y = jnp.where(y >= 0, y, neg_slope * y)
    return jnp.transpose(y, (0, 3, 1, 2))


# ----------------------------------- main -------------------------------------

if __name__ == "__main__":
    # DenoisingBlock(in_features=4, out_features=8, kernel=3, stride=1,
    #                bias=False, upsample=False / True)
    N, Cin, H, W = 2, 4, 16, 16
    Cout, K = 8, 3

    root = jax.random.PRNGKey(0)
    kx, kw, kg, kb, knoise = jax.random.split(root, 5)

    x = jax.random.normal(kx, (N, Cin, H, W), jnp.float32)
    weight = 0.1 * jax.random.normal(kw, (Cout, Cin, K, K), jnp.float32)
    gamma = 1.0 + 0.1 * jax.random.normal(kg, (Cout,), jnp.float32)
    beta = 0.1 * jax.random.normal(kb, (Cout,), jnp.float32)

    # Tolerances account for the bf16 output store (kernel) vs f32 reference output.
    ATOL = RTOL = 3e-2

    # no-upsample path
    out = denoising_block(x, weight, gamma, beta, knoise, kernel=K, stride=1,
                          upsample=False)
    out = jax.block_until_ready(out)
    ref = _reference(x, weight, gamma, beta, knoise, kernel=K, stride=1,
                     upsample=False)
    assert out.shape == (N, Cout, H, W), out.shape
    err = float(jnp.max(jnp.abs(out - ref)))
    assert jnp.allclose(out, ref, atol=ATOL, rtol=RTOL), err

    # upsample path (bilinear x2 then the same fused block)
    out_up = denoising_block(x, weight, gamma, beta, knoise, kernel=K, stride=1,
                             upsample=True)
    out_up = jax.block_until_ready(out_up)
    ref_up = _reference(x, weight, gamma, beta, knoise, kernel=K, stride=1,
                        upsample=True)
    assert out_up.shape == (N, Cout, 2 * H, 2 * W), out_up.shape
    err_up = float(jnp.max(jnp.abs(out_up - ref_up)))
    assert jnp.allclose(out_up, ref_up, atol=ATOL, rtol=RTOL), err_up

    print("KERNEL_OK")
</pallas_src>

<mosaic_0001>
module attributes {stable_mosaic.version = 11 : i64} {
  func.func @_fused_conv_bn_act_kernel(%arg0: i32, %arg1: memref<512x36xbf16, #tpu.memory_space<vmem>>, %arg2: memref<36x8xbf16, #tpu.memory_space<vmem>>, %arg3: memref<2x8xf32, #tpu.memory_space<vmem>>, %arg4: memref<512x8xbf16, #tpu.memory_space<vmem>>) attributes {dimension_semantics = [#tpu.dimension_semantics<arbitrary>], iteration_bounds = array<i64: 1>, scalar_prefetch = 0 : i64, scratch_operands = 0 : i64, tpu.core_type = #tpu.core_type<tc>, window_params = [{pipeline_mode = #tpu.pipeline_mode<synchronous>, transform_indices = @transform_0, window_bounds = array<i64: 512, 36>}, {pipeline_mode = #tpu.pipeline_mode<synchronous>, transform_indices = @transform_1, window_bounds = array<i64: 36, 8>}, {pipeline_mode = #tpu.pipeline_mode<synchronous>, transform_indices = @transform_2, window_bounds = array<i64: 2, 8>}, {pipeline_mode = #tpu.pipeline_mode<synchronous>, transform_indices = @transform_3, window_bounds = array<i64: 512, 8>}]} {
    %c0 = arith.constant 0 : index
    %c0_0 = arith.constant 0 : index
    %0 = vector.load %arg1[%c0, %c0_0] : memref<512x36xbf16, #tpu.memory_space<vmem>>, vector<512x36xbf16>
    %c0_1 = arith.constant 0 : index
    %c0_2 = arith.constant 0 : index
    %1 = vector.load %arg2[%c0_1, %c0_2] : memref<36x8xbf16, #tpu.memory_space<vmem>>, vector<36x8xbf16>
    %cst = arith.constant dense<0.000000e+00> : vector<512x8xf32>
    %2 = tpu.matmul %0, %1, %cst {dimension_numbers = #tpu.dot_dimension_numbers<[1], [0], [0], [1], [0, 0, 1, 1], [], []>} : vector<512x36xbf16>, vector<36x8xbf16>, vector<512x8xf32> -> vector<512x8xf32>
    %cst_3 = arith.constant dense<0.000000e+00> : vector<8xf32>
    %3 = vector.multi_reduction <add>, %2, %cst_3 [0] : vector<512x8xf32> to vector<8xf32>
    %4 = vector.shape_cast %3 : vector<8xf32> to vector<1x8xf32>
    %cst_4 = arith.constant 0.001953125 : f32
    %5 = vector.broadcast %cst_4 : f32 to vector<1x8xf32>
    %6 = arith.mulf %4, %5 : vector<1x8xf32>
    %7 = vector.broadcast %6 : vector<1x8xf32> to vector<512x8xf32>
    %8 = arith.subf %2, %7 : vector<512x8xf32>
    %9 = arith.mulf %8, %8 : vector<512x8xf32>
    %cst_5 = arith.constant dense<0.000000e+00> : vector<8xf32>
    %10 = vector.multi_reduction <add>, %9, %cst_5 [0] : vector<512x8xf32> to vector<8xf32>
    %11 = vector.shape_cast %10 : vector<8xf32> to vector<1x8xf32>
    %cst_6 = arith.constant 0.001953125 : f32
    %12 = vector.broadcast %cst_6 : f32 to vector<1x8xf32>
    %13 = arith.mulf %11, %12 : vector<1x8xf32>
    %c0_7 = arith.constant 0 : index
    %c0_8 = arith.constant 0 : index
    %14 = vector.load %arg3[%c0_7, %c0_8] : memref<2x8xf32, #tpu.memory_space<vmem>>, vector<1x8xf32>
    %cst_9 = arith.constant 9.99999974E-6 : f32
    %15 = vector.broadcast %cst_9 : f32 to vector<1x8xf32>
    %16 = arith.addf %13, %15 : vector<1x8xf32>
    %17 = math.rsqrt %16 : vector<1x8xf32>
    %18 = arith.mulf %14, %17 : vector<1x8xf32>
    %19 = vector.broadcast %18 : vector<1x8xf32> to vector<512x8xf32>
    %20 = arith.mulf %8, %19 : vector<512x8xf32>
    %c1 = arith.constant 1 : index
    %c0_10 = arith.constant 0 : index
    %21 = vector.load %arg3[%c1, %c0_10] : memref<2x8xf32, #tpu.memory_space<vmem>>, vector<1x8xf32>
    %22 = vector.broadcast %21 : vector<1x8xf32> to vector<512x8xf32>
    %23 = arith.addf %20, %22 : vector<512x8xf32>
    %cst_11 = arith.constant 2.000000e-01 : f32
    %24 = vector.broadcast %cst_11 : f32 to vector<512x8xf32>
    %25 = arith.mulf %24, %23 : vector<512x8xf32>
    %26 = arith.maximumf %23, %25 : vector<512x8xf32>
    %27 = arith.truncf %26 : vector<512x8xf32> to vector<512x8xbf16>
    %c0_12 = arith.constant 0 : index
    %c0_13 = arith.constant 0 : index
    %28 = vector.load %arg4[%c0_12, %c0_13] : memref<512x8xbf16, #tpu.memory_space<vmem>>, vector<512x8xbf16>
    tpu.vector_store %arg4[%c0_12, %c0_13], %27 {strides = array<i32>} : memref<512x8xbf16, #tpu.memory_space<vmem>>, vector<512x8xbf16>,
    return
  }
  func.func @transform_0(%arg0: i32) -> (i32, i32) {
    %c0_i32 = arith.constant 0 : i32
    %c0_i32_0 = arith.constant 0 : i32
    %c0_i32_1 = arith.constant 0 : i32
    return %c0_i32, %c0_i32_0 : i32, i32
  }
  func.func @transform_1(%arg0: i32) -> (i32, i32) {
    %c0_i32 = arith.constant 0 : i32
    %c0_i32_0 = arith.constant 0 : i32
    %c0_i32_1 = arith.constant 0 : i32
    return %c0_i32, %c0_i32_0 : i32, i32
  }
  func.func @transform_2(%arg0: i32) -> (i32, i32) {
    %c0_i32 = arith.constant 0 : i32
    %c0_i32_0 = arith.constant 0 : i32
    %c0_i32_1 = arith.constant 0 : i32
    return %c0_i32, %c0_i32_0 : i32, i32
  }
  func.func @transform_3(%arg0: i32) -> (i32, i32) {
    %c0_i32 = arith.constant 0 : i32
    %c0_i32_0 = arith.constant 0 : i32
    %c0_i32_1 = arith.constant 0 : i32
    return %c0_i32, %c0_i32_0 : i32, i32
  }
}

</mosaic_0001>

<bundles_post_ra>
// kernel: denoising_block.1
= control target key start
LH: loop header
LB: loop body
LE: loop exit
PB: predicated region body
PF: predicated region fallthrough
CT: control target
= control target key end

     0   :  { %vm356_vm0 = vcmask 1041408   ;;  %vm259_vm1 = vcmask 293888   ;;  %vm529_vm2 = vcmask 64512   ;;  %vm1262_vm6 = vcmask 60416   ;;  %s3033_s1 = inlined_call_operand.vmem [shape: bf16[36,8], index: 1, kind: input, shape index: {}]   ;;  %s3034_s0 = inlined_call_operand.vmem [shape: bf16[512,36], index: 0, kind: input, shape index: {}]   ;;  %s3035_s2 = inlined_call_operand.vmem [shape: f32[2,8], index: 2, kind: input, shape index: {}]   ;;  %s3036_s3 = inlined_call_operand.vmem [shape: bf16[512,8], index: 3, kind: output, shape index: {}]  }
   0x1   :  { %v83_v0 = vld [vmem:[%s3033_s1 + $0x10] sm:$0x3]  ;;  %v1532_v4 = vld [vmem:[%s3033_s1 + $0x8] sm:$0xff]  ;;  %v1531_v5 = vld [vmem:[%s3033_s1] sm:$0xff] }
   0x2   :  { %v253_v1 = vunpack.c.l.b16 %v83_v0  ;;  %v1499_v6 = vld [vmem:[%s3034_s0] sm:$0xff]  ;;  %v1500_v8 = vld [vmem:[%s3034_s0 + $0x8] sm:$0xff]  ;;  %v1501_v11 = vld [vmem:[%s3034_s0 + $0x10] sm:$0xff] }
   0x3   :  { %v1507_v7 = vld [vmem:[%s3034_s0 + $0x40] sm:$0xff]  ;;  %v1508_v9 = vld [vmem:[%s3034_s0 + $0x48] sm:$0xff]  ;;  %v1509_v12 = vld [vmem:[%s3034_s0 + $0x50] sm:$0xff] }
   0x4   :  { %v256_v2 = vpack.c.b16 %v253_v1, %v253_v1  ;;  %v1515_v10 = vld [vmem:[%s3034_s0 + $0x80] sm:$0xff]  ;;  %v1516_v13 = vld [vmem:[%s3034_s0 + $0x88] sm:$0xff]  ;;  %v1502_v14 = vld [vmem:[%s3034_s0 + $0x18] sm:$0xff] }
   0x5   :  { %v1510_v15 = vld [vmem:[%s3034_s0 + $0x58] sm:$0xff]  ;;  %v1517_v16 = vld [vmem:[%s3034_s0 + $0x90] sm:$0xff]  ;;  %v1523_v17 = vld [vmem:[%s3034_s0 + $0xc0] sm:$0xff] }
   0x6   :  { %v358_v3 = vsel %vm356_vm0, %v256_v2, 0  ;;  %v1503_v18 = vld [vmem:[%s3034_s0 + $0x20] sm:$0xff]  ;;  %v1518_v20 = vld [vmem:[%s3034_s0 + $0x98] sm:$0xff]  ;;  %v1524_v21 = vld [vmem:[%s3034_s0 + $0xc8] sm:$0xff] }
   0x7   :  { %365 = vmatpush.bf16.msra.mxu0 %v358_v3  ;;  %1533 = vmatpush.bf16.msra.mxu1 %v358_v3  ;;  %v1511_v19 = vld [vmem:[%s3034_s0 + $0x60] sm:$0xff]  ;;  %v1504_v22 = vld [vmem:[%s3034_s0 + $0x28] sm:$0xff]  ;;  %v1525_v25 = vld [vmem:[%s3034_s0 + $0xd0] sm:$0xff] }
   0x8   :  { %1534 = vmatpush.bf16.msra.mxu2 %v358_v3  ;;  %1535 = vmatpush.bf16.msra.mxu3 %v358_v3  ;;  %v1512_v23 = vld [vmem:[%s3034_s0 + $0x68] sm:$0xff]  ;;  %v1519_v24 = vld [vmem:[%s3034_s0 + $0xa0] sm:$0xff]  ;;  %v1505_v26 = vld [vmem:[%s3034_s0 + $0x30] sm:$0xff] }
   0x9   :  { %v1513_v27 = vld [vmem:[%s3034_s0 + $0x70] sm:$0xff]  ;;  %v1520_v28 = vld [vmem:[%s3034_s0 + $0xa8] sm:$0xff]  ;;  %v1526_v29 = vld [vmem:[%s3034_s0 + $0xd8] sm:$0xff] }
   0xa   :  { %v1506_v30 = vld [vmem:[%s3034_s0 + $0x38] sm:$0xff]  ;;  %v1521_v32 = vld [vmem:[%s3034_s0 + $0xb0] sm:$0xff]  ;;  %v1527_v33 = vld [vmem:[%s3034_s0 + $0xe0] sm:$0xff] }
   0xb   :  { %366 = vmatpush.bf16.msra.mxu0 %v1532_v4  ;;  %1536 = vmatpush.bf16.msra.mxu1 %v1532_v4  ;;  %v1514_v31 = vld [vmem:[%s3034_s0 + $0x78] sm:$0xff]  ;;  %v1528_v37 = vld [vmem:[%s3034_s0 + $0xe8] sm:$0xff]  ;;  %v1529_v41 = vld [vmem:[%s3034_s0 + $0xf0] sm:$0xff] }
   0xc   :  { %1537 = vmatpush.bf16.msra.mxu2 %v1532_v4  ;;  %1538 = vmatpush.bf16.msra.mxu3 %v1532_v4  ;;  %v1522_v36 = vld [vmem:[%s3034_s0 + $0xb8] sm:$0xff] }
   0xd   :  { %v1530_v47 = vld [vmem:[%s3034_s0 + $0xf8] sm:$0xff] }
   0xf   :  { %367 = vmatpush.bf16.msra.mxu0 %v1531_v5  ;;  %1539 = vmatpush.bf16.msra.mxu1 %v1531_v5 }
  0x10   :  { %1540 = vmatpush.bf16.msra.mxu2 %v1531_v5  ;;  %1541 = vmatpush.bf16.msra.mxu3 %v1531_v5 }
  0x12   :  { %1467 = vmatmul.msk.bf16.vlgmr.msra.gmra.mxu0 %vm259_vm1, %v1499_v6  ;;  %1475 = vmatmul.msk.bf16.vlgmr.msra.gmra.mxu1 %vm259_vm1, %v1507_v7 }
  0x13   :  { %1483 = vmatmul.msk.bf16.vlgmr.msra.gmra.mxu2 %vm259_vm1, %v1515_v10  ;;  %1491 = vmatmul.msk.bf16.vlgmr.msra.gmra.mxu3 %vm259_vm1, %v1523_v17 }
  0x22   :  { %1468 = vmatmul.msk.bf16.gmra.mxu0 %vm259_vm1, %v1500_v8  ;;  %1476 = vmatmul.msk.bf16.gmra.mxu1 %vm259_vm1, %v1508_v9 }
  0x23   :  { %1484 = vmatmul.msk.bf16.gmra.mxu2 %vm259_vm1, %v1516_v13  ;;  %1492 = vmatmul.msk.bf16.gmra.mxu3 %vm259_vm1, %v1524_v21 }
  0x32   :  { %1469 = vmatmul.msk.bf16.gmra.mxu0 %vm259_vm1, %v1501_v11  ;;  %1477 = vmatmul.msk.bf16.gmra.mxu1 %vm259_vm1, %v1509_v12 }
  0x33   :  { %1485 = vmatmul.msk.bf16.gmra.mxu2 %vm259_vm1, %v1517_v16  ;;  %1493 = vmatmul.msk.bf16.gmra.mxu3 %vm259_vm1, %v1525_v25 }
  0x42   :  { %1470 = vmatmul.msk.bf16.gmra.mxu0 %vm259_vm1, %v1502_v14  ;;  %1478 = vmatmul.msk.bf16.gmra.mxu1 %vm259_vm1, %v1510_v15 }
  0x43   :  { %1486 = vmatmul.msk.bf16.gmra.mxu2 %vm259_vm1, %v1518_v20  ;;  %1494 = vmatmul.msk.bf16.gmra.mxu3 %vm259_vm1, %v1526_v29 }
  0x52   :  { %1471 = vmatmul.msk.bf16.gmra.mxu0 %vm259_vm1, %v1503_v18  ;;  %1479 = vmatmul.msk.bf16.gmra.mxu1 %vm259_vm1, %v1511_v19 }
  0x53   :  { %1487 = vmatmul.msk.bf16.gmra.mxu2 %vm259_vm1, %v1519_v24  ;;  %1495 = vmatmul.msk.bf16.gmra.mxu3 %vm259_vm1, %v1527_v33 }
  0x62   :  { %1472 = vmatmul.msk.bf16.gmra.mxu0 %vm259_vm1, %v1504_v22  ;;  %1480 = vmatmul.msk.bf16.gmra.mxu1 %vm259_vm1, %v1512_v23 }
  0x63   :  { %1488 = vmatmul.msk.bf16.gmra.mxu2 %vm259_vm1, %v1520_v28  ;;  %1496 = vmatmul.msk.bf16.gmra.mxu3 %vm259_vm1, %v1528_v37 }
  0x72   :  { %1473 = vmatmul.msk.bf16.gmra.mxu0 %vm259_vm1, %v1505_v26  ;;  %1481 = vmatmul.msk.bf16.gmra.mxu1 %vm259_vm1, %v1513_v27 }
  0x73   :  { %1489 = vmatmul.msk.bf16.gmra.mxu2 %vm259_vm1, %v1521_v32  ;;  %1497 = vmatmul.msk.bf16.gmra.mxu3 %vm259_vm1, %v1529_v41 }
  0x82   :  { %1474 = vmatmul.msk.bf16.gmra.mxu0 %vm259_vm1, %v1506_v30  ;;  %1482 = vmatmul.msk.bf16.gmra.mxu1 %vm259_vm1, %v1514_v31 }
  0x83   :  { %1490 = vmatmul.msk.bf16.gmra.mxu2 %vm259_vm1, %v1522_v36  ;;  %1498 = vmatmul.msk.bf16.gmra.mxu3 %vm259_vm1, %v1530_v47 }
  0x8f   :  { %v1686_v34 = vpop.f32.mrf.mxu0  ;;  %v1688_v35 = vpop.f32.mrf.mxu1 }
  0x90   :  { %v530_v7 = vsel %vm529_vm2, %v1686_v34, 0.0 }
  0x96   :  { %v1714_v45 = vpop.f32.mrf.mxu2  ;;  %v1748_v61 = vpop.f32.mrf.mxu3 }
  0x97   :  { %v1698_v38 = vpop.f32.mrf.mxu0  ;;  %v1700_v39 = vpop.f32.mrf.mxu1 }
  0x98   :  { %v531_v4 = vsel %vm529_vm2, %v1698_v38, 0.0 }
  0x99   :  { %v532_v9 = vadd.f32 %v531_v4, %v530_v7 }
  0x9e   :  { %v1726_v50 = vpop.f32.mrf.mxu2  ;;  %v1756_v1 = vpop.f32.mrf.mxu3 }
  0x9f   :  { %v1702_v40 = vpop.f32.mrf.mxu0  ;;  %v1707_v42 = vpop.f32.mrf.mxu1 }
  0xa0   :  { %v533_v8 = vsel %vm529_vm2, %v1702_v40, 0.0 }
  0xa1   :  { %v534_v11 = vadd.f32 %v533_v8, %v532_v9 }
  0xa6   :  { %v1732_v53 = vpop.f32.mrf.mxu2  ;;  %v1766_v6 = vpop.f32.mrf.mxu3 }
  0xa7   :  { %v1710_v43 = vpop.f32.mrf.mxu0  ;;  %v1712_v44 = vpop.f32.mrf.mxu1  ;;  %3075 = vst [vmem:[#allocation4_spill] sm:$0xff] %v1766_v6 }
  0xa8   :  { %v535_v10 = vsel %vm529_vm2, %v1710_v43, 0.0 }
  0xa9   :  { %v536_v14 = vadd.f32 %v535_v10, %v534_v11 }
  0xae   :  { %v1738_v56 = vpop.f32.mrf.mxu2  ;;  %v1786_v21 = vpop.f32.mrf.mxu3 }
  0xaf   :  { %v1716_v46 = vpop.f32.mrf.mxu0  ;;  %v1724_v49 = vpop.f32.mrf.mxu1  ;;  %3073 = vst [vmem:[#allocation2_spill] sm:$0xff] %v1738_v56 }
  0xb0   :  { %v537_v13 = vsel %vm529_vm2, %v1716_v46, 0.0 }
  0xb1   :  { %v538_v16 = vadd.f32 %v537_v13, %v536_v14 }
  0xb6   :  { %v1744_v59 = vpop.f32.mrf.mxu2  ;;  %v1806_v41 = vpop.f32.mrf.mxu3 }
  0xb7   :  { %v1722_v48 = vpop.f32.mrf.mxu0  ;;  %v1730_v52 = vpop.f32.mrf.mxu1  ;;  %3074 = vst [vmem:[#allocation3_spill] sm:$0xff] %v1744_v59 }
  0xb8   :  { %v539_v15 = vsel %vm529_vm2, %v1722_v48, 0.0 }
  0xb9   :  { %v540_v20 = vadd.f32 %v539_v15, %v538_v16 }
  0xbe   :  { %v1754_v0 = vpop.f32.mrf.mxu2 }
  0xbf   :  { %v1728_v51 = vpop.f32.mrf.mxu0  ;;  %v1736_v55 = vpop.f32.mrf.mxu1 }
  0xc0   :  { %v541_v18 = vsel %vm529_vm2, %v1728_v51, 0.0 }
  0xc1   :  { %v542_v23 = vadd.f32 %v541_v18, %v540_v20  ;;  %v1822_v20 = vpop.f32.mrf.mxu3 }
  0xc6   :  { %v1764_v5 = vpop.f32.mrf.mxu2 }
  0xc7   :  { %v1734_v54 = vpop.f32.mrf.mxu0  ;;  %v1742_v58 = vpop.f32.mrf.mxu1 }
  0xc8   :  { %v543_v22 = vsel %vm529_vm2, %v1734_v54, 0.0 }
  0xc9   :  { %v544_v26 = vadd.f32 %v543_v22, %v542_v23  ;;  %v561_v22 = vsel %vm529_vm2, %v1688_v35, 0.0 }
  0xce   :  { %v1784_v19 = vpop.f32.mrf.mxu2 }
  0xcf   :  { %v1740_v57 = vpop.f32.mrf.mxu0  ;;  %v1752_v63 = vpop.f32.mrf.mxu1 }
  0xd0   :  { %v545_v25 = vsel %vm529_vm2, %v1740_v57, 0.0 }
  0xd1   :  { %v546_v28 = vadd.f32 %v545_v25, %v544_v26  ;;  %v563_v25 = vsel %vm529_vm2, %v1700_v39, 0.0 }
  0xd6   :  { %v1802_v33 = vpop.f32.mrf.mxu2 }
  0xd7   :  { %v1746_v60 = vpop.f32.mrf.mxu0  ;;  %v1760_v3 = vpop.f32.mrf.mxu1  ;;  %3076 = vst [vmem:[#allocation5_spill] sm:$0xff] %v1802_v33 }
  0xd8   :  { %v547_v27 = vsel %vm529_vm2, %v1746_v60, 0.0 }
  0xd9   :  { %v548_v30 = vadd.f32 %v547_v27, %v546_v28  ;;  %v565_v27 = vsel %vm529_vm2, %v1707_v42, 0.0 }
  0xde   :  { %v1820_v18 = vpop.f32.mrf.mxu2 }
  0xdf   :  { %v1750_v62 = vpop.f32.mrf.mxu0  ;;  %v1780_v17 = vpop.f32.mrf.mxu1  ;;  %3077 = vst [vmem:[#allocation6_spill] sm:$0xff] %v1820_v18 }
  0xe0   :  { %v549_v29 = vsel %vm529_vm2, %v1750_v62, 0.0 }
  0xe1   :  { %v550_v36 = vadd.f32 %v549_v29, %v548_v30  ;;  %v567_v29 = vsel %vm529_vm2, %v1712_v44, 0.0 }
  0xe7   :  { %v1758_v2 = vpop.f32.mrf.mxu0  ;;  %v1798_v31 = vpop.f32.mrf.mxu1 }
  0xe8   :  { %v551_v32 = vsel %vm529_vm2, %v1758_v2, 0.0 }
  0xe9   :  { %v552_v4 = vadd.f32 %v551_v32, %v550_v36  ;;  %v569_v36 = vsel %vm529_vm2, %v1724_v49, 0.0 }
  0xef   :  { %v1774_v12 = vpop.f32.mrf.mxu0  ;;  %v1816_v14 = vpop.f32.mrf.mxu1 }
  0xf0   :  { %v553_v47 = vsel %vm529_vm2, %v1774_v12, 0.0 }
  0xf1   :  { %v554_v8 = vadd.f32 %v553_v47, %v552_v4  ;;  %v1836_v4 = vpop.f32.mrf.mxu2 }
  0xf7   :  { %v1790_v24 = vpop.f32.mrf.mxu0  ;;  %v1832_v32 = vpop.f32.mrf.mxu1 }
  0xf8   :  { %v555_v7 = vsel %vm529_vm2, %v1790_v24, 0.0  ;;  %3078 = vst [vmem:[#allocation7_spill] sm:$0xff] %v1832_v32 }
  0xf9   :  { %v556_v10 = vadd.f32 %v555_v7, %v554_v8  ;;  %v1838_v7 = vpop.f32.mrf.mxu3  ;;  %v571_v8 = vsel %vm529_vm2, %v1730_v52, 0.0 }
  0xff   :  { %v1804_v37 = vpop.f32.mrf.mxu0 }
 0x100   :  { %v557_v9 = vsel %vm529_vm2, %v1804_v37, 0.0 }
 0x101   :  { %v558_v11 = vadd.f32 %v557_v9, %v556_v10  ;;  %v573_v10 = vsel %vm529_vm2, %v1736_v55, 0.0 }
 0x107   :  { %v1814_v13 = vpop.f32.mrf.mxu0 }
 0x108   :  { %v559_v15 = vsel %vm529_vm2, %v1814_v13, 0.0 }
 0x109   :  { %v560_v16 = vadd.f32 %v559_v15, %v558_v11  ;;  %v575_v15 = vsel %vm529_vm2, %v1742_v58, 0.0 }
 0x10b   :  { %v562_v23 = vadd.f32 %v561_v22, %v560_v16  ;;  %v577_v22 = vsel %vm529_vm2, %v1752_v63, 0.0 }
 0x10d   :  { %v564_v26 = vadd.f32 %v563_v25, %v562_v23  ;;  %v1848_v25 = vpop.f32.mrf.mxu1 }
 0x10e   :  { %3079 = vst [vmem:[#allocation8_spill] sm:$0xff] %v1848_v25 }
 0x10f   :  { %v566_v28 = vadd.f32 %v565_v27, %v564_v26  ;;  %v579_v26 = vsel %vm529_vm2, %v1760_v3, 0.0 }
 0x111   :  { %v568_v30 = vadd.f32 %v567_v29, %v566_v28  ;;  %v1852_v28 = vpop.f32.mrf.mxu2  ;;  %v1854_v29 = vpop.f32.mrf.mxu3 }
 0x112   :  { %3080 = vst [vmem:[#allocation9_spill] sm:$0xff] %v1854_v29 }
 0x113   :  { %v570_v47 = vadd.f32 %v569_v36, %v568_v30  ;;  %v581_v30 = vsel %vm529_vm2, %v1780_v17, 0.0 }
 0x115   :  { %v572_v9 = vadd.f32 %v571_v8, %v570_v47  ;;  %v583_v47 = vsel %vm529_vm2, %v1798_v31, 0.0 }
 0x117   :  { %v574_v11 = vadd.f32 %v573_v10, %v572_v9  ;;  %v585_v9 = vsel %vm529_vm2, %v1816_v14, 0.0 }
 0x119   :  { %v576_v16 = vadd.f32 %v575_v15, %v574_v11  ;;  %v587_v11 = vsel %vm529_vm2, %v1832_v32, 0.0 }
 0x11b   :  { %v578_v23 = vadd.f32 %v577_v22, %v576_v16  ;;  %v1864_v16 = vpop.f32.mrf.mxu1  ;;  %v589_v22 = vsel %vm529_vm2, %v1848_v25, 0.0 }
 0x11c   :  { %3081 = vst [vmem:[#allocation10_spill] sm:$0xff] %v1864_v16 }
 0x11d   :  { %v580_v27 = vadd.f32 %v579_v26, %v578_v23  ;;  %v1868_v26 = vpop.f32.mrf.mxu2 }
 0x11f   :  { %v582_v36 = vadd.f32 %v581_v30, %v580_v27  ;;  %v1870_v27 = vpop.f32.mrf.mxu3  ;;  %v591_v30 = vsel %vm529_vm2, %v1864_v16, 0.0 }
 0x121   :  { %v584_v8 = vadd.f32 %v583_v47, %v582_v36  ;;  %v593_v47 = vsel %vm529_vm2, %v1714_v45, 0.0 }
 0x123   :  { %v586_v10 = vadd.f32 %v585_v9, %v584_v8  ;;  %v595_v9 = vsel %vm529_vm2, %v1726_v50, 0.0 }
 0x125   :  { %v588_v15 = vadd.f32 %v587_v11, %v586_v10  ;;  %v597_v11 = vsel %vm529_vm2, %v1732_v53, 0.0  ;;  %v1882_v32 = vpop.f32.mrf.mxu2 }
 0x126   :  { %3082 = vst [vmem:[#allocation11_spill] sm:$0xff] %v1882_v32 }
 0x127   :  { %v590_v23 = vadd.f32 %v589_v22, %v588_v15  ;;  %v599_v22 = vsel %vm529_vm2, %v1738_v56, 0.0  ;;  %v1884_v16 = vpop.f32.mrf.mxu3 }
 0x128   :  { %3083 = vst [vmem:[#allocation12_spill] sm:$0xff] %v1884_v16 }
 0x129   :  { %v592_v36 = vadd.f32 %v591_v30, %v590_v23  ;;  %v601_v23 = vsel %vm529_vm2, %v1744_v59, 0.0 }
 0x12b   :  { %v594_v8 = vadd.f32 %v593_v47, %v592_v36  ;;  %v603_v36 = vsel %vm529_vm2, %v1754_v0, 0.0 }
 0x12d   :  { %v596_v10 = vadd.f32 %v595_v9, %v594_v8  ;;  %v605_v8 = vsel %vm529_vm2, %v1764_v5, 0.0  ;;  %v1896_v56 = vpop.f32.mrf.mxu2 }
 0x12f   :  { %v598_v15 = vadd.f32 %v597_v11, %v596_v10  ;;  %v607_v10 = vsel %vm529_vm2, %v1784_v19, 0.0  ;;  %v1898_v59 = vpop.f32.mrf.mxu3 }
 0x130   :  { %3084 = vst [vmem:[#allocation13_spill] sm:$0xff] %v1898_v59 }
 0x131   :  { %v600_v25 = vadd.f32 %v599_v22, %v598_v15  ;;  %v609_v15 = vsel %vm529_vm2, %v1802_v33, 0.0 }
 0x133   :  { %v602_v30 = vadd.f32 %v601_v23, %v600_v25  ;;  %v611_v25 = vsel %vm529_vm2, %v1820_v18, 0.0 }
 0x135   :  { %v604_v47 = vadd.f32 %v603_v36, %v602_v30  ;;  %v613_v30 = vsel %vm529_vm2, %v1836_v4, 0.0  ;;  %v1910_v33 = vpop.f32.mrf.mxu2 }
 0x137   :  { %v606_v9 = vadd.f32 %v605_v8, %v604_v47  ;;  %v615_v47 = vsel %vm529_vm2, %v1852_v28, 0.0  ;;  %v1912_v18 = vpop.f32.mrf.mxu3 }
 0x138   :  { %3085 = vst [vmem:[#allocation14_spill] sm:$0xff] %v1912_v18 }
 0x139   :  { %v608_v11 = vadd.f32 %v607_v10, %v606_v9  ;;  %v617_v9 = vsel %vm529_vm2, %v1868_v26, 0.0 }
 0x13b   :  { %v610_v22 = vadd.f32 %v609_v15, %v608_v11  ;;  %v619_v11 = vsel %vm529_vm2, %v1882_v32, 0.0 }
 0x13d   :  { %v612_v23 = vadd.f32 %v611_v25, %v610_v22  ;;  %v621_v22 = vsel %vm529_vm2, %v1896_v56, 0.0 }
 0x13f   :  { %v614_v36 = vadd.f32 %v613_v30, %v612_v23  ;;  %v623_v23 = vsel %vm529_vm2, %v1910_v33, 0.0  ;;  %v1924_v32 = vpop.f32.mrf.mxu3 }
 0x140   :  { %3086 = vst [vmem:[#allocation15_spill] sm:$0xff] %v1924_v32 }
 0x141   :  { %v616_v8 = vadd.f32 %v615_v47, %v614_v36  ;;  %v625_v36 = vsel %vm529_vm2, %v1748_v61, 0.0 }
 0x143   :  { %v618_v10 = vadd.f32 %v617_v9, %v616_v8  ;;  %v627_v8 = vsel %vm529_vm2, %v1756_v1, 0.0 }
 0x145   :  { %v620_v15 = vadd.f32 %v619_v11, %v618_v10  ;;  %v629_v10 = vsel %vm529_vm2, %v1766_v6, 0.0 }
 0x147   :  { %v622_v25 = vadd.f32 %v621_v22, %v620_v15  ;;  %v631_v15 = vsel %vm529_vm2, %v1786_v21, 0.0  ;;  %v1936_v6 = vpop.f32.mrf.mxu3 }
 0x149   :  { %v624_v30 = vadd.f32 %v623_v23, %v622_v25  ;;  %v633_v25 = vsel %vm529_vm2, %v1806_v41, 0.0 }
 0x14b   :  { %v626_v47 = vadd.f32 %v625_v36, %v624_v30  ;;  %v635_v30 = vsel %vm529_vm2, %v1822_v20, 0.0 }
 0x14d   :  { %v628_v9 = vadd.f32 %v627_v8, %v626_v47  ;;  %v637_v47 = vsel %vm529_vm2, %v1838_v7, 0.0 }
 0x14f   :  { %v630_v11 = vadd.f32 %v629_v10, %v628_v9  ;;  %v639_v9 = vsel %vm529_vm2, %v1854_v29, 0.0  ;;  %v1946_v29 = vpop.f32.mrf.mxu3 }
 0x151   :  { %v632_v22 = vadd.f32 %v631_v15, %v630_v11  ;;  %v641_v11 = vsel %vm529_vm2, %v1870_v27, 0.0 }
 0x153   :  { %v634_v23 = vadd.f32 %v633_v25, %v632_v22  ;;  %v643_v22 = vsel %vm529_vm2, %v1884_v16, 0.0 }
 0x155   :  { %v636_v36 = vadd.f32 %v635_v30, %v634_v23  ;;  %v645_v23 = vsel %vm529_vm2, %v1898_v59, 0.0 }
 0x157   :  { %v638_v8 = vadd.f32 %v637_v47, %v636_v36  ;;  %v647_v36 = vsel %vm529_vm2, %v1912_v18, 0.0  ;;  %v1954_v59 = vpop.f32.mrf.mxu3 }
 0x159   :  { %v640_v10 = vadd.f32 %v639_v9, %v638_v8  ;;  %v649_v8 = vsel %vm529_vm2, %v1924_v32, 0.0 }
 0x15b   :  { %v642_v15 = vadd.f32 %v641_v11, %v640_v10  ;;  %v651_v10 = vsel %vm529_vm2, %v1936_v6, 0.0 }
 0x15d   :  { %v644_v25 = vadd.f32 %v643_v22, %v642_v15  ;;  %v653_v15 = vsel %vm529_vm2, %v1946_v29, 0.0 }
 0x15f   :  { %v646_v30 = vadd.f32 %v645_v23, %v644_v25  ;;  %v655_v25 = vsel %vm529_vm2, %v1954_v59, 0.0 }
 0x161   :  { %v648_v47 = vadd.f32 %v647_v36, %v646_v30 }
 0x163   :  { %v650_v9 = vadd.f32 %v649_v8, %v648_v47 }
 0x165   :  { %v652_v11 = vadd.f32 %v651_v10, %v650_v9 }
 0x167   :  { %v654_v22 = vadd.f32 %v653_v15, %v652_v11 }
 0x169   :  { %v656_v23 = vadd.f32 %v655_v25, %v654_v22 }
 0x16b   :  { %v657_v30 = vrot.slane %v656_v23, 4 }
 0x16d   :  { %v658_v36 = vadd.f32 %v657_v30, %v656_v23 }
 0x16f   :  { %v659_v18 = vrot.slane %v658_v36, 2 }
 0x171   :  { %v660_v16 = vadd.f32 %v659_v18, %v658_v36 }
 0x173   :  { %v661_v32 = vrot.slane %v660_v16, 1 }
 0x175   :  { %v662_v47 = vadd.f32 %v661_v32, %v660_v16 }
 0x177   :  { %v1958_v8 = vmul.f32 0.001953125, %v662_v47 }
 0x179   :  { %v1962_v9 = vsub.f32 %v1686_v34, %v1958_v8  ;;  %v1966_v10 = vsub.f32 %v1698_v38, %v1958_v8  ;;  %v1970_v11 = vsub.f32 %v1702_v40, %v1958_v8  ;;  %v1974_v15 = vsub.f32 %v1710_v43, %v1958_v8 }
 0x17a   :  { %v1982_v34 = vsub.f32 %v1716_v46, %v1958_v8  ;;  %v1988_v40 = vsub.f32 %v1722_v48, %v1958_v8  ;;  %v1996_v23 = vsub.f32 %v1728_v51, %v1958_v8  ;;  %v2003_v48 = vsub.f32 %v1734_v54, %v1958_v8 }
 0x17b   :  { %v728_v18 = vmul.f32 %v1962_v9, %v1962_v9  ;;  %v729_v32 = vmul.f32 %v1966_v10, %v1966_v10  ;;  %v730_v38 = vmul.f32 %v1970_v11, %v1970_v11  ;;  %v731_v43 = vmul.f32 %v1974_v15, %v1974_v15 }
 0x17c   :  { %v732_v46 = vmul.f32 %v1982_v34, %v1982_v34  ;;  %v733_v47 = vmul.f32 %v1988_v40, %v1988_v40  ;;  %v2010_v51 = vsub.f32 %v1740_v57, %v1958_v8  ;;  %v2017_v54 = vsub.f32 %v1746_v60, %v1958_v8 }
 0x17d   :  { %v792_v16 = vsel %vm529_vm2, %v728_v18, 0.0  ;;  %v793_v22 = vsel %vm529_vm2, %v729_v32, 0.0  ;;  %v795_v30 = vsel %vm529_vm2, %v730_v38, 0.0  ;;  %v797_v18 = vsel %vm529_vm2, %v731_v43, 0.0 }
 0x17e   :  { %v794_v25 = vadd.f32 %v793_v22, %v792_v16  ;;  %v734_v16 = vmul.f32 %v1996_v23, %v1996_v23  ;;  %v799_v38 = vsel %vm529_vm2, %v732_v46, 0.0  ;;  %v801_v43 = vsel %vm529_vm2, %v733_v47, 0.0 }
 0x17f   :  { %v2024_v57 = vsub.f32 %v1750_v62, %v1958_v8  ;;  %v2031_v60 = vsub.f32 %v1758_v2, %v1958_v8  ;;  %v2038_v62 = vsub.f32 %v1774_v12, %v1958_v8  ;;  %v2045_v2 = vsub.f32 %v1790_v24, %v1958_v8 }
 0x180   :  { %v796_v36 = vadd.f32 %v795_v30, %v794_v25  ;;  %v735_v25 = vmul.f32 %v2003_v48, %v2003_v48  ;;  %v803_v46 = vsel %vm529_vm2, %v734_v16, 0.0  ;;  %v2052_v12 = vsub.f32 %v1804_v37, %v1958_v8 }
 0x181   :  { %v2059_v24 = vsub.f32 %v1814_v13, %v1958_v8  ;;  %v2066_v37 = vsub.f32 %v1688_v35, %v1958_v8  ;;  %v2073_v13 = vsub.f32 %v1700_v39, %v1958_v8  ;;  %v2080_v35 = vsub.f32 %v1707_v42, %v1958_v8 }
 0x182   :  { %v798_v32 = vadd.f32 %v797_v18, %v796_v36  ;;  %v736_v36 = vmul.f32 %v2010_v51, %v2010_v51  ;;  %v805_v47 = vsel %vm529_vm2, %v735_v25, 0.0  ;;  %v2087_v39 = vsub.f32 %v1712_v44, %v1958_v8 }
 0x183   :  { %v2094_v42 = vsub.f32 %v1724_v49, %v1958_v8  ;;  %v2101_v44 = vsub.f32 %v1730_v52, %v1958_v8  ;;  %v2108_v49 = vsub.f32 %v1736_v55, %v1958_v8  ;;  %v2115_v52 = vsub.f32 %v1742_v58, %v1958_v8 }
 0x184   :  { %v800_v22 = vadd.f32 %v799_v38, %v798_v32  ;;  %v737_v32 = vmul.f32 %v2017_v54, %v2017_v54  ;;  %v807_v16 = vsel %vm529_vm2, %v736_v36, 0.0  ;;  %v2122_v55 = vsub.f32 %v1752_v63, %v1958_v8 }
 0x185   :  { %v2129_v58 = vsub.f32 %v1760_v3, %v1958_v8  ;;  %v2136_v63 = vsub.f32 %v1780_v17, %v1958_v8  ;;  %v2143_v3 = vsub.f32 %v1798_v31, %v1958_v8  ;;  %v2150_v17 = vsub.f32 %v1816_v14, %v1958_v8 }
 0x186   :  { %v802_v30 = vadd.f32 %v801_v43, %v800_v22  ;;  %v738_v22 = vmul.f32 %v2024_v57, %v2024_v57  ;;  %v809_v25 = vsel %vm529_vm2, %v737_v32, 0.0 }
 0x187   :  { %3087 = vst [vmem:[#allocation16_spill] sm:$0xff] %v2136_v63 }
 0x188   :  { %v804_v18 = vadd.f32 %v803_v46, %v802_v30  ;;  %v739_v30 = vmul.f32 %v2031_v60, %v2031_v60  ;;  %v811_v36 = vsel %vm529_vm2, %v738_v22, 0.0  ;;  %3088 = vst [vmem:[#allocation17_spill] sm:$0xff] %v2143_v3 }
 0x18a   :  { %v806_v38 = vadd.f32 %v805_v47, %v804_v18  ;;  %v740_v18 = vmul.f32 %v2038_v62, %v2038_v62  ;;  %v813_v32 = vsel %vm529_vm2, %v739_v30, 0.0 }
 0x18c   :  { %v808_v43 = vadd.f32 %v807_v16, %v806_v38  ;;  %v741_v38 = vmul.f32 %v2045_v2, %v2045_v2  ;;  %v815_v22 = vsel %vm529_vm2, %v740_v18, 0.0 }
 0x18e   :  { %v810_v46 = vadd.f32 %v809_v25, %v808_v43  ;;  %v742_v43 = vmul.f32 %v2052_v12, %v2052_v12  ;;  %v817_v30 = vsel %vm529_vm2, %v741_v38, 0.0 }
 0x190   :  { %v812_v47 = vadd.f32 %v811_v36, %v810_v46  ;;  %v743_v46 = vmul.f32 %v2059_v24, %v2059_v24  ;;  %v819_v18 = vsel %vm529_vm2, %v742_v43, 0.0 }
 0x192   :  { %v814_v16 = vadd.f32 %v813_v32, %v812_v47  ;;  %v744_v47 = vmul.f32 %v2066_v37, %v2066_v37  ;;  %v821_v38 = vsel %vm529_vm2, %v743_v46, 0.0 }
 0x194   :  { %v816_v25 = vadd.f32 %v815_v22, %v814_v16  ;;  %v745_v16 = vmul.f32 %v2073_v13, %v2073_v13  ;;  %v823_v43 = vsel %vm529_vm2, %v744_v47, 0.0 }
 0x196   :  { %v818_v36 = vadd.f32 %v817_v30, %v816_v25  ;;  %v746_v25 = vmul.f32 %v2080_v35, %v2080_v35  ;;  %v825_v46 = vsel %vm529_vm2, %v745_v16, 0.0 }
 0x198   :  { %v820_v32 = vadd.f32 %v819_v18, %v818_v36  ;;  %v747_v36 = vmul.f32 %v2087_v39, %v2087_v39  ;;  %v827_v47 = vsel %vm529_vm2, %v746_v25, 0.0 }
 0x19a   :  { %v822_v22 = vadd.f32 %v821_v38, %v820_v32  ;;  %v748_v32 = vmul.f32 %v2094_v42, %v2094_v42  ;;  %v829_v16 = vsel %vm529_vm2, %v747_v36, 0.0 }
 0x19c   :  { %v824_v30 = vadd.f32 %v823_v43, %v822_v22  ;;  %v749_v22 = vmul.f32 %v2101_v44, %v2101_v44  ;;  %v831_v25 = vsel %vm529_vm2, %v748_v32, 0.0 }
 0x19e   :  { %v826_v18 = vadd.f32 %v825_v46, %v824_v30  ;;  %v750_v30 = vmul.f32 %v2108_v49, %v2108_v49  ;;  %v833_v36 = vsel %vm529_vm2, %v749_v22, 0.0 }
 0x1a0   :  { %v828_v38 = vadd.f32 %v827_v47, %v826_v18  ;;  %v751_v18 = vmul.f32 %v2115_v52, %v2115_v52  ;;  %v835_v32 = vsel %vm529_vm2, %v750_v30, 0.0 }
 0x1a2   :  { %v830_v43 = vadd.f32 %v829_v16, %v828_v38  ;;  %v752_v38 = vmul.f32 %v2122_v55, %v2122_v55  ;;  %v837_v22 = vsel %vm529_vm2, %v751_v18, 0.0 }
 0x1a4   :  { %v832_v46 = vadd.f32 %v831_v25, %v830_v43  ;;  %v753_v43 = vmul.f32 %v2129_v58, %v2129_v58  ;;  %v839_v30 = vsel %vm529_vm2, %v752_v38, 0.0 }
 0x1a6   :  { %v834_v47 = vadd.f32 %v833_v36, %v832_v46  ;;  %v754_v46 = vmul.f32 %v2136_v63, %v2136_v63  ;;  %v841_v18 = vsel %vm529_vm2, %v753_v43, 0.0  ;;  %v756_v63 = vmul.f32 %v2150_v17, %v2150_v17 }
 0x1a8   :  { %v836_v16 = vadd.f32 %v835_v32, %v834_v47  ;;  %v3089_v47 = vld [vmem:[#allocation7_spill] sm:$0xff]  ;;  %v755_v32 = vmul.f32 %v2143_v3, %v2143_v3  ;;  %v843_v38 = vsel %vm529_vm2, %v754_v46, 0.0  ;;  %v847_v46 = vsel %vm529_vm2, %v756_v63, 0.0 }
 0x1a9   :  { %v2157_v31 = vsub.f32 %v3089_v47, %v1958_v8 }
 0x1aa   :  { %v838_v25 = vadd.f32 %v837_v22, %v836_v16  ;;  %v3090_v22 = vld [vmem:[#allocation8_spill] sm:$0xff]  ;;  %v845_v43 = vsel %vm529_vm2, %v755_v32, 0.0 }
 0x1ab   :  { %v2164_v14 = vsub.f32 %v3090_v22, %v1958_v8  ;;  %v757_v3 = vmul.f32 %v2157_v31, %v2157_v31 }
 0x1ac   :  { %v840_v36 = vadd.f32 %v839_v30, %v838_v25  ;;  %v3091_v30 = vld [vmem:[#allocation10_spill] sm:$0xff] }
 0x1ad   :  { %v2171_v47 = vsub.f32 %v3091_v30, %v1958_v8  ;;  %v758_v22 = vmul.f32 %v2164_v14, %v2164_v14  ;;  %v849_v32 = vsel %vm529_vm2, %v757_v3, 0.0 }
 0x1ae   :  { %v842_v16 = vadd.f32 %v841_v18, %v840_v36  ;;  %v2178_v18 = vsub.f32 %v1714_v45, %v1958_v8  ;;  %v2192_v45 = vsub.f32 %v1732_v53, %v1958_v8 }
 0x1af   :  { %3092 = vst [vmem:[#allocation7_spill] sm:$0xff] %v2171_v47  ;;  %v759_v30 = vmul.f32 %v2171_v47, %v2171_v47  ;;  %v851_v63 = vsel %vm529_vm2, %v758_v22, 0.0 }
 0x1b0   :  { %v844_v25 = vadd.f32 %v843_v38, %v842_v16  ;;  %3093 = vst [vmem:[#allocation8_spill] sm:$0xff] %v2178_v18  ;;  %v2185_v38 = vsub.f32 %v1726_v50, %v1958_v8 }
 0x1b1   :  { %v853_v3 = vsel %vm529_vm2, %v759_v30, 0.0 }
 0x1b2   :  { %v846_v36 = vadd.f32 %v845_v43, %v844_v25  ;;  %v760_v43 = vmul.f32 %v2178_v18, %v2178_v18  ;;  %v761_v47 = vmul.f32 %v2185_v38, %v2185_v38  ;;  %v762_v18 = vmul.f32 %v2192_v45, %v2192_v45 }
 0x1b4   :  { %v848_v16 = vadd.f32 %v847_v46, %v846_v36  ;;  %v3094_v46 = vld [vmem:[#allocation2_spill] sm:$0xff]  ;;  %v855_v22 = vsel %vm529_vm2, %v760_v43, 0.0  ;;  %v857_v30 = vsel %vm529_vm2, %v761_v47, 0.0  ;;  %v859_v43 = vsel %vm529_vm2, %v762_v18, 0.0 }
 0x1b5   :  { %v2199_v50 = vsub.f32 %v3094_v46, %v1958_v8 }
 0x1b6   :  { %v850_v25 = vadd.f32 %v849_v32, %v848_v16  ;;  %v3095_v32 = vld [vmem:[#allocation3_spill] sm:$0xff] }
 0x1b7   :  { %v2206_v53 = vsub.f32 %v3095_v32, %v1958_v8  ;;  %v763_v46 = vmul.f32 %v2199_v50, %v2199_v50 }
 0x1b8   :  { %v852_v36 = vadd.f32 %v851_v63, %v850_v25  ;;  %v2213_v63 = vsub.f32 %v1754_v0, %v1958_v8  ;;  %v2227_v0 = vsub.f32 %v1784_v19, %v1958_v8 }
 0x1b9   :  { %3096 = vst [vmem:[#allocation10_spill] sm:$0xff] %v2206_v53  ;;  %v764_v32 = vmul.f32 %v2206_v53, %v2206_v53  ;;  %v861_v47 = vsel %vm529_vm2, %v763_v46, 0.0 }
 0x1ba   :  { %v854_v16 = vadd.f32 %v853_v3, %v852_v36  ;;  %3097 = vst [vmem:[#allocation2_spill] sm:$0xff] %v2213_v63  ;;  %v2220_v3 = vsub.f32 %v1764_v5, %v1958_v8 }
 0x1bb   :  { %v863_v18 = vsel %vm529_vm2, %v764_v32, 0.0 }
 0x1bc   :  { %v856_v25 = vadd.f32 %v855_v22, %v854_v16  ;;  %v765_v22 = vmul.f32 %v2213_v63, %v2213_v63  ;;  %v766_v53 = vmul.f32 %v2220_v3, %v2220_v3  ;;  %v767_v63 = vmul.f32 %v2227_v0, %v2227_v0 }
 0x1be   :  { %v858_v36 = vadd.f32 %v857_v30, %v856_v25  ;;  %v3098_v30 = vld [vmem:[#allocation5_spill] sm:$0xff]  ;;  %v865_v46 = vsel %vm529_vm2, %v765_v22, 0.0  ;;  %v867_v32 = vsel %vm529_vm2, %v766_v53, 0.0  ;;  %v869_v22 = vsel %vm529_vm2, %v767_v63, 0.0 }
 0x1bf   :  { %v2234_v5 = vsub.f32 %v3098_v30, %v1958_v8 }
 0x1c0   :  { %v860_v16 = vadd.f32 %v859_v43, %v858_v36  ;;  %v3099_v43 = vld [vmem:[#allocation6_spill] sm:$0xff] }
 0x1c1   :  { %v2241_v19 = vsub.f32 %v3099_v43, %v1958_v8  ;;  %v768_v30 = vmul.f32 %v2234_v5, %v2234_v5 }
 0x1c2   :  { %v862_v25 = vadd.f32 %v861_v47, %v860_v16  ;;  %v2248_v47 = vsub.f32 %v1836_v4, %v1958_v8  ;;  %v2262_v4 = vsub.f32 %v1868_v26, %v1958_v8  ;;  %v2276_v26 = vsub.f32 %v1896_v56, %v1958_v8 }
 0x1c3   :  { %3100 = vst [vmem:[#allocation3_spill] sm:$0xff] %v2241_v19  ;;  %v769_v43 = vmul.f32 %v2241_v19, %v2241_v19  ;;  %v871_v53 = vsel %vm529_vm2, %v768_v30, 0.0  ;;  %v2290_v56 = vsub.f32 %v1748_v61, %v1958_v8 }
 0x1c4   :  { %v864_v36 = vadd.f32 %v863_v18, %v862_v25  ;;  %v2255_v18 = vsub.f32 %v1852_v28, %v1958_v8  ;;  %3102 = vst [vmem:[#allocation5_spill] sm:$0xff] %v2276_v26 }
 0x1c5   :  { %v873_v63 = vsel %vm529_vm2, %v769_v43, 0.0 }
 0x1c6   :  { %v866_v16 = vadd.f32 %v865_v46, %v864_v36  ;;  %v770_v46 = vmul.f32 %v2248_v47, %v2248_v47  ;;  %v771_v19 = vmul.f32 %v2255_v18, %v2255_v18 }
 0x1c8   :  { %v868_v25 = vadd.f32 %v867_v32, %v866_v16  ;;  %v3101_v32 = vld [vmem:[#allocation11_spill] sm:$0xff]  ;;  %v875_v30 = vsel %vm529_vm2, %v770_v46, 0.0  ;;  %v877_v43 = vsel %vm529_vm2, %v771_v19, 0.0 }
 0x1c9   :  { %v2269_v28 = vsub.f32 %v3101_v32, %v1958_v8 }
 0x1ca   :  { %v870_v36 = vadd.f32 %v869_v22, %v868_v25  ;;  %v772_v22 = vmul.f32 %v2262_v4, %v2262_v4 }
 0x1cb   :  { %v773_v32 = vmul.f32 %v2269_v28, %v2269_v28 }
 0x1cc   :  { %v872_v16 = vadd.f32 %v871_v53, %v870_v36  ;;  %v2283_v53 = vsub.f32 %v1910_v33, %v1958_v8  ;;  %v879_v46 = vsel %vm529_vm2, %v772_v22, 0.0  ;;  %v2297_v33 = vsub.f32 %v1756_v1, %v1958_v8 }
 0x1cd   :  { %v881_v19 = vsel %vm529_vm2, %v773_v32, 0.0  ;;  %v2311_v1 = vsub.f32 %v1786_v21, %v1958_v8  ;;  %v2325_v21 = vsub.f32 %v1822_v20, %v1958_v8 }
 0x1ce   :  { %v874_v25 = vadd.f32 %v873_v63, %v872_v16  ;;  %v774_v63 = vmul.f32 %v2276_v26, %v2276_v26  ;;  %v776_v26 = vmul.f32 %v2290_v56, %v2290_v56 }
 0x1cf   :  { %3105 = vst [vmem:[#allocation11_spill] sm:$0xff] %v2311_v1 }
 0x1d0   :  { %v876_v36 = vadd.f32 %v875_v30, %v874_v25  ;;  %v775_v30 = vmul.f32 %v2283_v53, %v2283_v53  ;;  %v883_v22 = vsel %vm529_vm2, %v774_v63, 0.0  ;;  %v887_v63 = vsel %vm529_vm2, %v776_v26, 0.0  ;;  %3107 = vst [vmem:[#allocation18_spill] sm:$0xff] %v2325_v21 }
 0x1d2   :  { %v878_v16 = vadd.f32 %v877_v43, %v876_v36  ;;  %v3103_v43 = vld [vmem:[#allocation4_spill] sm:$0xff]  ;;  %v885_v32 = vsel %vm529_vm2, %v775_v30, 0.0 }
 0x1d3   :  { %v2304_v61 = vsub.f32 %v3103_v43, %v1958_v8 }
 0x1d4   :  { %v880_v25 = vadd.f32 %v879_v46, %v878_v16  ;;  %v777_v46 = vmul.f32 %v2297_v33, %v2297_v33 }
 0x1d5   :  { %3104 = vst [vmem:[#allocation6_spill] sm:$0xff] %v2304_v61  ;;  %v778_v43 = vmul.f32 %v2304_v61, %v2304_v61 }
 0x1d6   :  { %v882_v36 = vadd.f32 %v881_v19, %v880_v25  ;;  %v2318_v19 = vsub.f32 %v1806_v41, %v1958_v8  ;;  %v889_v30 = vsel %vm529_vm2, %v777_v46, 0.0  ;;  %v2332_v41 = vsub.f32 %v1838_v7, %v1958_v8 }
 0x1d7   :  { %v891_v26 = vsel %vm529_vm2, %v778_v43, 0.0  ;;  %v2346_v7 = vsub.f32 %v1870_v27, %v1958_v8 }
 0x1d8   :  { %v884_v16 = vadd.f32 %v883_v22, %v882_v36  ;;  %3106 = vst [vmem:[#allocation4_spill] sm:$0xff] %v2318_v19  ;;  %v779_v22 = vmul.f32 %v2311_v1, %v2311_v1  ;;  %v781_v1 = vmul.f32 %v2325_v21, %v2325_v21 }
 0x1d9   :  { %3108 = vst [vmem:[#allocation19_spill] sm:$0xff] %v2332_v41 }
 0x1da   :  { %v886_v25 = vadd.f32 %v885_v32, %v884_v16  ;;  %v780_v32 = vmul.f32 %v2318_v19, %v2318_v19  ;;  %v893_v46 = vsel %vm529_vm2, %v779_v22, 0.0  ;;  %3111 = vst [vmem:[#allocation20_spill] sm:$0xff] %v2346_v7  ;;  %v897_v22 = vsel %vm529_vm2, %v781_v1, 0.0 }
 0x1dc   :  { %v888_v36 = vadd.f32 %v887_v63, %v886_v25  ;;  %v3109_v63 = vld [vmem:[#allocation9_spill] sm:$0xff]  ;;  %v895_v43 = vsel %vm529_vm2, %v780_v32, 0.0 }
 0x1dd   :  { %v2339_v20 = vsub.f32 %v3109_v63, %v1958_v8 }
 0x1de   :  { %v890_v16 = vadd.f32 %v889_v30, %v888_v36  ;;  %v782_v30 = vmul.f32 %v2332_v41, %v2332_v41  ;;  %v784_v41 = vmul.f32 %v2346_v7, %v2346_v7 }
 0x1df   :  { %3110 = vst [vmem:[#allocation9_spill] sm:$0xff] %v2339_v20  ;;  %v783_v21 = vmul.f32 %v2339_v20, %v2339_v20 }
 0x1e0   :  { %v892_v25 = vadd.f32 %v891_v26, %v890_v16  ;;  %v3112_v26 = vld [vmem:[#allocation12_spill] sm:$0xff]  ;;  %v899_v32 = vsel %vm529_vm2, %v782_v30, 0.0  ;;  %v903_v30 = vsel %vm529_vm2, %v784_v41, 0.0 }
 0x1e1   :  { %v2353_v63 = vsub.f32 %v3112_v26, %v1958_v8  ;;  %v901_v1 = vsel %vm529_vm2, %v783_v21, 0.0 }
 0x1e2   :  { %v894_v36 = vadd.f32 %v893_v46, %v892_v25  ;;  %v3114_v46 = vld [vmem:[#allocation13_spill] sm:$0xff] }
 0x1e3   :  { %3113 = vst [vmem:[#allocation12_spill] sm:$0xff] %v2353_v63  ;;  %v2360_v27 = vsub.f32 %v3114_v46, %v1958_v8  ;;  %v785_v20 = vmul.f32 %v2353_v63, %v2353_v63 }
 0x1e4   :  { %v896_v16 = vadd.f32 %v895_v43, %v894_v36  ;;  %v3116_v43 = vld [vmem:[#allocation14_spill] sm:$0xff] }
 0x1e5   :  { %3115 = vst [vmem:[#allocation13_spill] sm:$0xff] %v2360_v27  ;;  %v2367_v26 = vsub.f32 %v3116_v43, %v1958_v8  ;;  %v786_v7 = vmul.f32 %v2360_v27, %v2360_v27  ;;  %v905_v21 = vsel %vm529_vm2, %v785_v20, 0.0 }
 0x1e6   :  { %v898_v25 = vadd.f32 %v897_v22, %v896_v16  ;;  %v3118_v22 = vld [vmem:[#allocation15_spill] sm:$0xff] }
 0x1e7   :  { %3117 = vst [vmem:[#allocation14_spill] sm:$0xff] %v2367_v26  ;;  %v2374_v46 = vsub.f32 %v3118_v22, %v1958_v8  ;;  %v787_v43 = vmul.f32 %v2367_v26, %v2367_v26  ;;  %v907_v41 = vsel %vm529_vm2, %v786_v7, 0.0 }
 0x1e8   :  { %v900_v36 = vadd.f32 %v899_v32, %v898_v25  ;;  %v2381_v32 = vsub.f32 %v1936_v6, %v1958_v8  ;;  %v727_v6 = vsub.f32 %v1954_v59, %v1958_v8 }
 0x1e9   :  { %3119 = vst [vmem:[#allocation15_spill] sm:$0xff] %v2374_v46  ;;  %v788_v22 = vmul.f32 %v2374_v46, %v2374_v46  ;;  %v909_v26 = vsel %vm529_vm2, %v787_v43, 0.0 }
 0x1ea   :  { %v902_v16 = vadd.f32 %v901_v1, %v900_v36  ;;  %3120 = vst [vmem:[#allocation21_spill] sm:$0xff] %v2381_v32  ;;  %v2388_v1 = vsub.f32 %v1946_v29, %v1958_v8  ;;  %v791_v27 = vmul.f32 %v727_v6, %v727_v6 }
 0x1eb   :  { %v911_v29 = vsel %vm529_vm2, %v788_v22, 0.0 }
 0x1ec   :  { %v904_v25 = vadd.f32 %v903_v30, %v902_v16  ;;  %3121 = vst [vmem:[#allocation22_spill] sm:$0xff] %v2388_v1  ;;  %v789_v30 = vmul.f32 %v2381_v32, %v2381_v32  ;;  %v917_v59 = vsel %vm529_vm2, %v791_v27, 0.0  ;;  %v926_v27 = vld [vmem:[%s3035_s2] sm:$0x1] }
 0x1ee   :  { %v906_v36 = vadd.f32 %v905_v21, %v904_v25  ;;  %v790_v25 = vmul.f32 %v2388_v1, %v2388_v1  ;;  %v913_v46 = vsel %vm529_vm2, %v789_v30, 0.0 }
 0x1f0   :  { %v908_v16 = vadd.f32 %v907_v41, %v906_v36  ;;  %v915_v36 = vsel %vm529_vm2, %v790_v25, 0.0 }
 0x1f2   :  { %v910_v20 = vadd.f32 %v909_v26, %v908_v16 }
 0x1f4   :  { %v912_v21 = vadd.f32 %v911_v29, %v910_v20 }
 0x1f6   :  { %v914_v7 = vadd.f32 %v913_v46, %v912_v21 }
 0x1f8   :  { %v916_v41 = vadd.f32 %v915_v36, %v914_v7 }
 0x1fa   :  { %v918_v8 = vadd.f32 %v917_v59, %v916_v41 }
 0x1fc   :  { %v919_v32 = vrot.slane %v918_v8, 4 }
 0x1fe   :  { %v920_v63 = vadd.f32 %v919_v32, %v918_v8 }
 0x200   :  { %v921_v43 = vrot.slane %v920_v63, 2 }
 0x202   :  { %v922_v26 = vadd.f32 %v921_v43, %v920_v63 }
 0x204   :  { %v923_v16 = vrot.slane %v922_v26, 1 }
 0x206   :  { %v924_v19 = vadd.f32 %v923_v16, %v922_v26  ;;  %v3125_v26 = vld [vmem:[#allocation7_spill] sm:$0xff] }
 0x208   :  { %v925_v1 = vmul.f32 0.001953125, %v924_v19 }
 0x20a   :  { %v927_v61 = vadd.f32 1e-05, %v925_v1  ;;  %v2413_v1 = vld [vmem:[%s3035_s2 + $0x1] ss:$0 sm:$0xff] }
 0x20c   :  { %1543 = vrsqrt.f32 %v927_v61  ;;  %vm934_vm4 = vweird.f32 %v927_v61 }
 0x212   :  { %v1544_v22 = vpop.eup %1543 }
 0x213   :  { %v929_v20 = vmul.f32 %v1544_v22, %v927_v61  ;;  %vm935_vm3 = vweird.f32 %v1544_v22 }
 0x214   :  { %vm936_vm5 = vmor %vm934_vm4, %vm935_vm3 }
 0x215   :  { %v930_v29 = vmul.f32 %v1544_v22, %v929_v20 }
 0x217   :  { %v931_v30 = vmul.f32 0.5, %v930_v29  ;;  %v3127_v29 = vld [vmem:[#allocation10_spill] sm:$0xff] }
 0x219   :  { %v932_v46 = vsub.f32 1.5, %v931_v30 }
 0x21b   :  { %v933_v21 = vmul.f32 %v1544_v22, %v932_v46  ;;  %v3128_v46 = vld [vmem:[#allocation2_spill] sm:$0xff] }
 0x21d   :  { %v937_v32 = vsel %vm936_vm5, %v1544_v22, %v933_v21  ;;  %v3126_v22 = vld [vmem:[#allocation8_spill] sm:$0xff] }
 0x21e   :  { %v938_v63 = vmul.f32 %v937_v32, %v926_v27  ;;  %v3129_v27 = vld [vmem:[#allocation3_spill] sm:$0xff] }
 0x220   :  { %v2407_v25 = vperm.slane %v938_v63, 0 }
 0x222   :  { %v1003_v19 = vmul.f32 %v2407_v25, %v727_v6  ;;  %v940_v61 = vmul.f32 %v2407_v25, %v1962_v9  ;;  %v941_v36 = vmul.f32 %v2407_v25, %v1966_v10  ;;  %v942_v41 = vmul.f32 %v2407_v25, %v1970_v11 }
 0x223   :  { %v943_v6 = vmul.f32 %v2407_v25, %v1974_v15  ;;  %v944_v59 = vmul.f32 %v2407_v25, %v1982_v34  ;;  %v945_v8 = vmul.f32 %v2407_v25, %v1988_v40  ;;  %v946_v43 = vmul.f32 %v2407_v25, %v1996_v23 }
 0x224   :  { %v2416_v7 = vadd.f32 %v2413_v1, %v1003_v19  ;;  %v2434_v9 = vmul.f32 %v2407_v25, %v2003_v48  ;;  %v2438_v10 = vmul.f32 %v2407_v25, %v2010_v51  ;;  %v2442_v11 = vmul.f32 %v2407_v25, %v2017_v54 }
 0x225   :  { %v2446_v15 = vmul.f32 %v2407_v25, %v2024_v57  ;;  %v2450_v34 = vmul.f32 %v2407_v25, %v2031_v60  ;;  %v2454_v40 = vmul.f32 %v2407_v25, %v2038_v62  ;;  %v2458_v23 = vmul.f32 %v2407_v25, %v2045_v2 }
 0x226   :  { %3122 = vst [vmem:[#allocation23_spill] sm:$0xff] %v2416_v7  ;;  %v2462_v48 = vmul.f32 %v2407_v25, %v2052_v12  ;;  %v2466_v51 = vmul.f32 %v2407_v25, %v2059_v24  ;;  %v2470_v54 = vmul.f32 %v2407_v25, %v2066_v37  ;;  %v2474_v57 = vmul.f32 %v2407_v25, %v2073_v13  ;;  %v3145_v7 = vld [vmem:[#allocation19_spill] sm:$0xff] }
 0x227   :  { %v2478_v60 = vmul.f32 %v2407_v25, %v2080_v35  ;;  %v2482_v62 = vmul.f32 %v2407_v25, %v2087_v39  ;;  %v2486_v2 = vmul.f32 %v2407_v25, %v2094_v42  ;;  %v2490_v12 = vmul.f32 %v2407_v25, %v2101_v44  ;;  %v3123_v39 = vld [vmem:[#allocation16_spill] sm:$0xff]  ;;  %v3124_v44 = vld [vmem:[#allocation17_spill] sm:$0xff] }
 0x228   :  { %v2494_v24 = vmul.f32 %v2407_v25, %v2108_v49  ;;  %v2498_v37 = vmul.f32 %v2407_v25, %v2115_v52  ;;  %v2502_v13 = vmul.f32 %v2407_v25, %v2122_v55  ;;  %v2506_v35 = vmul.f32 %v2407_v25, %v2129_v58 }
 0x229   :  { %v2510_v42 = vmul.f32 %v2407_v25, %v3123_v39  ;;  %v2514_v49 = vmul.f32 %v2407_v25, %v3124_v44  ;;  %v2518_v52 = vmul.f32 %v2407_v25, %v2150_v17  ;;  %v2522_v55 = vmul.f32 %v2407_v25, %v2157_v31  ;;  %v3132_v44 = vld [vmem:[#allocation5_spill] sm:$0xff] }
 0x22a   :  { %v2526_v58 = vmul.f32 %v2407_v25, %v2164_v14  ;;  %v2530_v16 = vmul.f32 %v2407_v25, %v3125_v26  ;;  %v2534_v20 = vmul.f32 %v2407_v25, %v3126_v22  ;;  %v2538_v17 = vmul.f32 %v2407_v25, %v2185_v38  ;;  %v3137_v26 = vld [vmem:[#allocation6_spill] sm:$0xff]  ;;  %v3139_v22 = vld [vmem:[#allocation11_spill] sm:$0xff] }
 0x22b   :  { %v2542_v31 = vmul.f32 %v2407_v25, %v2192_v45  ;;  %v2546_v14 = vmul.f32 %v2407_v25, %v2199_v50  ;;  %v2550_v30 = vmul.f32 %v2407_v25, %v3127_v29  ;;  %v2554_v21 = vmul.f32 %v2407_v25, %v3128_v46  ;;  %v3141_v46 = vld [vmem:[#allocation4_spill] sm:$0xff] }
 0x22c   :  { %v2558_v38 = vmul.f32 %v2407_v25, %v2220_v3  ;;  %v2562_v45 = vmul.f32 %v2407_v25, %v2227_v0  ;;  %v2566_v50 = vmul.f32 %v2407_v25, %v2234_v5  ;;  %v2570_v32 = vmul.f32 %v2407_v25, %v3129_v27  ;;  %v3143_v27 = vld [vmem:[#allocation18_spill] sm:$0xff] }
 0x22d   :  { %v2574_v63 = vmul.f32 %v2407_v25, %v2248_v47  ;;  %v1006_v19 = vadd.f32 %v2413_v1, %v940_v61  ;;  %v2579_v3 = vmul.f32 %v2407_v25, %v2255_v18  ;;  %v2583_v0 = vmul.f32 %v2407_v25, %v2262_v4 }
 0x22e   :  { %v2587_v5 = vmul.f32 %v2407_v25, %v2269_v28  ;;  %v1007_v39 = vadd.f32 %v2413_v1, %v941_v36  ;;  %v2592_v47 = vmul.f32 %v2407_v25, %v3132_v44  ;;  %v2596_v61 = vmul.f32 %v2407_v25, %v2283_v53 }
 0x22f   :  { %3130 = vst [vmem:[#allocation16_spill] sm:$0xff] %v2583_v0  ;;  %v2600_v18 = vmul.f32 %v2407_v25, %v2290_v56  ;;  %v1008_v4 = vadd.f32 %v2413_v1, %v942_v41  ;;  %v2605_v28 = vmul.f32 %v2407_v25, %v2297_v33  ;;  %v2609_v36 = vmul.f32 %v2407_v25, %v3137_v26 }
 0x230   :  { %3131 = vst [vmem:[#allocation17_spill] sm:$0xff] %v2587_v5  ;;  %v2613_v29 = vmul.f32 %v2407_v25, %v3139_v22  ;;  %v1009_v53 = vadd.f32 %v2413_v1, %v943_v6  ;;  %v2618_v56 = vmul.f32 %v2407_v25, %v3141_v46  ;;  %v2622_v41 = vmul.f32 %v2407_v25, %v3143_v27  ;;  %v3149_v46 = vld [vmem:[#allocation20_spill] sm:$0xff] }
 0x231   :  { %3133 = vst [vmem:[#allocation7_spill] sm:$0xff] %v2592_v47  ;;  %v1010_v33 = vadd.f32 %v2413_v1, %v944_v59  ;;  %v1070_v44 = vmul.f32 0.2, %v1006_v19  ;;  %v2627_v26 = vmul.f32 %v2407_v25, %v3145_v7  ;;  %v1011_v6 = vadd.f32 %v2413_v1, %v945_v8  ;;  %v3151_v27 = vld [vmem:[#allocation12_spill] sm:$0xff]  ;;  %v3153_v7 = vld [vmem:[#allocation13_spill] sm:$0xff] }
 0x232   :  { %3134 = vst [vmem:[#allocation8_spill] sm:$0xff] %v2596_v61  ;;  %v1012_v59 = vadd.f32 %v2413_v1, %v946_v43  ;;  %v1013_v8 = vadd.f32 %v2413_v1, %v2434_v9  ;;  %v1014_v43 = vadd.f32 %v2413_v1, %v2438_v10  ;;  %v3159_v61 = vld [vmem:[#allocation21_spill] sm:$0xff]  ;;  %v3161_v9 = vld [vmem:[#allocation22_spill] sm:$0xff] }
 0x233   :  { %3135 = vst [vmem:[#allocation10_spill] sm:$0xff] %v2600_v18  ;;  %v2667_v47 = vmul.f32 %v2407_v25, %v3161_v9  ;;  %v1020_v9 = vadd.f32 %v2413_v1, %v2462_v48  ;;  %v1023_v48 = vadd.f32 %v2413_v1, %v2474_v57  ;;  %v1025_v57 = vadd.f32 %v2413_v1, %v2482_v62 }
 0x234   :  { %3136 = vst [vmem:[#allocation2_spill] sm:$0xff] %v2605_v28  ;;  %v1072_v28 = vmul.f32 0.2, %v1008_v4  ;;  %v1027_v62 = vadd.f32 %v2413_v1, %v2490_v12  ;;  %v1029_v12 = vadd.f32 %v2413_v1, %v2498_v37  ;;  %v1031_v37 = vadd.f32 %v2413_v1, %v2506_v35 }
 0x235   :  { %3138 = vst [vmem:[#allocation3_spill] sm:$0xff] %v2609_v36  ;;  %v3147_v36 = vld [vmem:[#allocation9_spill] sm:$0xff]  ;;  %v1033_v35 = vadd.f32 %v2413_v1, %v2514_v49  ;;  %v1035_v49 = vadd.f32 %v2413_v1, %v2522_v55  ;;  %v1037_v55 = vadd.f32 %v2413_v1, %v2530_v16  ;;  %v1039_v16 = vadd.f32 %v2413_v1, %v2538_v17 }
 0x236   :  { %3140 = vst [vmem:[#allocation5_spill] sm:$0xff] %v2613_v29  ;;  %v2631_v22 = vmul.f32 %v2407_v25, %v3147_v36  ;;  %v1071_v29 = vmul.f32 0.2, %v1007_v39  ;;  %v3155_v36 = vld [vmem:[#allocation14_spill] sm:$0xff]  ;;  %v1136_v10 = vmax.f32 %v1008_v4, %v1072_v28  ;;  %v1041_v17 = vadd.f32 %v2413_v1, %v2546_v14 }
 0x237   :  { %3142 = vst [vmem:[#allocation6_spill] sm:$0xff] %v2618_v56  ;;  %v2636_v56 = vmul.f32 %v2407_v25, %v3149_v46  ;;  %v1073_v46 = vmul.f32 0.2, %v1009_v53  ;;  %v1043_v14 = vadd.f32 %v2413_v1, %v2554_v21  ;;  %v1045_v21 = vadd.f32 %v2413_v1, %v2562_v45 }
 0x238   :  { %3144 = vst [vmem:[#allocation11_spill] sm:$0xff] %v2622_v41  ;;  %v2640_v41 = vmul.f32 %v2407_v25, %v3151_v27  ;;  %v1074_v27 = vmul.f32 0.2, %v1010_v33  ;;  %v1047_v45 = vadd.f32 %v2413_v1, %v2570_v32  ;;  %v1049_v32 = vadd.f32 %v2413_v1, %v2579_v3  ;;  %v3164_v3 = vld [vmem:[#allocation17_spill] sm:$0xff] }
 0x239   :  { %3146 = vst [vmem:[#allocation4_spill] sm:$0xff] %v2627_v26  ;;  %v2645_v26 = vmul.f32 %v2407_v25, %v3153_v7  ;;  %v2661_v7 = vmul.f32 %v2407_v25, %v3159_v61  ;;  %v1018_v61 = vadd.f32 %v2413_v1, %v2454_v40  ;;  %v1200_v40 = vpack.c.bf16 %v1136_v10, %v1136_v10 }
 0x23a   :  { %3148 = vst [vmem:[#allocation18_spill] sm:$0xff] %v2631_v22  ;;  %v2649_v22 = vmul.f32 %v2407_v25, %v3155_v36  ;;  %v1015_v36 = vadd.f32 %v2413_v1, %v2442_v11  ;;  %v1019_v11 = vadd.f32 %v2413_v1, %v2458_v23  ;;  %v1022_v23 = vadd.f32 %v2413_v1, %v2470_v54 }
 0x23b   :  { %3150 = vst [vmem:[#allocation19_spill] sm:$0xff] %v2636_v56  ;;  %v3157_v56 = vld [vmem:[#allocation15_spill] sm:$0xff]  ;;  %v1024_v54 = vadd.f32 %v2413_v1, %v2478_v60  ;;  %v1026_v60 = vadd.f32 %v2413_v1, %v2486_v2  ;;  %v1028_v2 = vadd.f32 %v2413_v1, %v2494_v24  ;;  %v1030_v24 = vadd.f32 %v2413_v1, %v2502_v13 }
 0x23c   :  { %3152 = vst [vmem:[#allocation9_spill] sm:$0xff] %v2640_v41  ;;  %v2655_v18 = vmul.f32 %v2407_v25, %v3157_v56  ;;  %v1134_v41 = vmax.f32 %v1006_v19, %v1070_v44  ;;  %v1016_v56 = vadd.f32 %v2413_v1, %v2446_v15  ;;  %v1017_v19 = vadd.f32 %v2413_v1, %v2450_v34 }
 0x23d   :  { %3154 = vst [vmem:[#allocation20_spill] sm:$0xff] %v2645_v26  ;;  %v1135_v26 = vmax.f32 %v1007_v39, %v1071_v29  ;;  %v1077_v44 = vmul.f32 0.2, %v1013_v8  ;;  %v1078_v39 = vmul.f32 0.2, %v1014_v43  ;;  %v1138_v29 = vmax.f32 %v1010_v33, %v1074_v27 }
 0x23e   :  { %3156 = vst [vmem:[#allocation12_spill] sm:$0xff] %v2649_v22  ;;  %v1075_v22 = vmul.f32 0.2, %v1011_v6  ;;  %v1198_v25 = vpack.c.bf16 %v1134_v41, %v1134_v41  ;;  %v1079_v15 = vmul.f32 0.2, %v1015_v36  ;;  %v1021_v34 = vadd.f32 %v2413_v1, %v2466_v51 }
 0x23f   :  { %3158 = vst [vmem:[#allocation13_spill] sm:$0xff] %v2655_v18  ;;  %v1076_v18 = vmul.f32 0.2, %v1012_v59  ;;  %v1199_v4 = vpack.c.bf16 %v1135_v26, %v1135_v26  ;;  %v1080_v28 = vmul.f32 0.2, %v1016_v56  ;;  %v1142_v33 = vmax.f32 %v1014_v43, %v1078_v39 }
 0x240   :  { %3160 = vst [vmem:[#allocation14_spill] sm:$0xff] %v2661_v7  ;;  %v1137_v7 = vmax.f32 %v1009_v53, %v1073_v46  ;;  %v1081_v0 = vmul.f32 0.2, %v1017_v19  ;;  %v1141_v53 = vmax.f32 %v1013_v8, %v1077_v44  ;;  %v1082_v41 = vmul.f32 0.2, %v1018_v61 }
 0x241   :  { %3162 = vst [vmem:[#allocation15_spill] sm:$0xff] %v2667_v47  ;;  %v1139_v47 = vmax.f32 %v1011_v6, %v1075_v22  ;;  %v1140_v5 = vmax.f32 %v1012_v59, %v1076_v18  ;;  %v1202_v27 = vpack.c.bf16 %v1138_v29, %v1138_v29  ;;  %v1083_v51 = vmul.f32 0.2, %v1019_v11 }
 0x242   :  { %v1201_v46 = vpack.c.bf16 %v1137_v7, %v1137_v7  ;;  %1263 = vst.msk [vmem:[%s3036_s3] sm:$0xf] %vm1262_vm6, %v1198_v25  ;;  %v1143_v18 = vmax.f32 %v1015_v36, %v1079_v15  ;;  %v1084_v22 = vmul.f32 0.2, %v1020_v9  ;;  %v1144_v6 = vmax.f32 %v1016_v56, %v1080_v28 }
 0x243   :  { %v1203_v26 = vpack.c.bf16 %v1139_v47, %v1139_v47  ;;  %1264 = vst.msk [vmem:[%s3036_s3 + $0x4] sm:$0xf] %vm1262_vm6, %v1199_v4  ;;  %v1204_v59 = vpack.c.bf16 %v1140_v5, %v1140_v5  ;;  %v1085_v47 = vmul.f32 0.2, %v1021_v34  ;;  %v1145_v8 = vmax.f32 %v1017_v19, %v1081_v0 }
 0x244   :  { %1265 = vst.msk [vmem:[%s3036_s3 + $0x8] sm:$0xf] %vm1262_vm6, %v1200_v40  ;;  %v1205_v43 = vpack.c.bf16 %v1141_v53, %v1141_v53  ;;  %v1086_v5 = vmul.f32 0.2, %v1022_v23  ;;  %v1146_v7 = vmax.f32 %v1018_v61, %v1082_v41  ;;  %v1206_v36 = vpack.c.bf16 %v1142_v33, %v1142_v33 }
 0x245   :  { %1266 = vst.msk [vmem:[%s3036_s3 + $0xc] sm:$0xf] %vm1262_vm6, %v1201_v46  ;;  %v1087_v0 = vmul.f32 0.2, %v1023_v48  ;;  %v1147_v56 = vmax.f32 %v1019_v11, %v1083_v51  ;;  %v1207_v10 = vpack.c.bf16 %v1143_v18, %v1143_v18  ;;  %v1088_v19 = vmul.f32 0.2, %v1024_v54 }
 0x246   :  { %1267 = vst.msk [vmem:[%s3036_s3 + $0x10] sm:$0xf] %vm1262_vm6, %v1202_v27  ;;  %v1148_v61 = vmax.f32 %v1020_v9, %v1084_v22  ;;  %v1208_v44 = vpack.c.bf16 %v1144_v6, %v1144_v6  ;;  %v1089_v11 = vmul.f32 0.2, %v1025_v57  ;;  %v1149_v39 = vmax.f32 %v1021_v34, %v1085_v47 }
 0x247   :  { %1268 = vst.msk [vmem:[%s3036_s3 + $0x14] sm:$0xf] %vm1262_vm6, %v1203_v26  ;;  %v1209_v29 = vpack.c.bf16 %v1145_v8, %v1145_v8  ;;  %v1090_v25 = vmul.f32 0.2, %v1026_v60  ;;  %v1150_v9 = vmax.f32 %v1022_v23, %v1086_v5  ;;  %v1210_v15 = vpack.c.bf16 %v1146_v7, %v1146_v7 }
 0x248   :  { %1269 = vst.msk [vmem:[%s3036_s3 + $0x18] sm:$0xf] %vm1262_vm6, %v1204_v59  ;;  %v1091_v4 = vmul.f32 0.2, %v1027_v62  ;;  %v1151_v34 = vmax.f32 %v1023_v48, %v1087_v0  ;;  %v1211_v28 = vpack.c.bf16 %v1147_v56, %v1147_v56  ;;  %v1032_v13 = vadd.f32 %v2413_v1, %v2510_v42 }
 0x249   :  { %1270 = vst.msk [vmem:[%s3036_s3 + $0x1c] sm:$0xf] %vm1262_vm6, %v1205_v43  ;;  %v1092_v40 = vmul.f32 0.2, %v1028_v2  ;;  %v1152_v53 = vmax.f32 %v1024_v54, %v1088_v19  ;;  %v1212_v46 = vpack.c.bf16 %v1148_v61, %v1148_v61  ;;  %v1093_v23 = vmul.f32 0.2, %v1029_v12 }
 0x24a   :  { %1271 = vst.msk [vmem:[%s3036_s3 + $0x20] sm:$0xf] %vm1262_vm6, %v1206_v36  ;;  %v1153_v41 = vmax.f32 %v1025_v57, %v1089_v11  ;;  %v1213_v33 = vpack.c.bf16 %v1149_v39, %v1149_v39  ;;  %v1034_v42 = vadd.f32 %v2413_v1, %v2518_v52  ;;  %v1094_v27 = vmul.f32 0.2, %v1030_v24 }
 0x24b   :  { %1272 = vst.msk [vmem:[%s3036_s3 + $0x24] sm:$0xf] %vm1262_vm6, %v1207_v10  ;;  %v1154_v48 = vmax.f32 %v1026_v60, %v1090_v25  ;;  %v1214_v51 = vpack.c.bf16 %v1150_v9, %v1150_v9  ;;  %v1095_v18 = vmul.f32 0.2, %v1031_v37  ;;  %v1155_v26 = vmax.f32 %v1027_v62, %v1091_v4 }
 0x24c   :  { %1273 = vst.msk [vmem:[%s3036_s3 + $0x28] sm:$0xf] %vm1262_vm6, %v1208_v44  ;;  %v1215_v54 = vpack.c.bf16 %v1151_v34, %v1151_v34  ;;  %v1036_v52 = vadd.f32 %v2413_v1, %v2526_v58  ;;  %v1096_v22 = vmul.f32 0.2, %v1032_v13  ;;  %v1156_v6 = vmax.f32 %v1028_v2, %v1092_v40 }
 0x24d   :  { %1274 = vst.msk [vmem:[%s3036_s3 + $0x2c] sm:$0xf] %vm1262_vm6, %v1209_v29  ;;  %v1216_v59 = vpack.c.bf16 %v1152_v53, %v1152_v53  ;;  %v1097_v57 = vmul.f32 0.2, %v1033_v35  ;;  %v1157_v47 = vmax.f32 %v1029_v12, %v1093_v23  ;;  %v1217_v8 = vpack.c.bf16 %v1153_v41, %v1153_v41 }
 0x24e   :  { %1275 = vst.msk [vmem:[%s3036_s3 + $0x30] sm:$0xf] %vm1262_vm6, %v1210_v15  ;;  %v1038_v58 = vadd.f32 %v2413_v1, %v2534_v20  ;;  %v1098_v43 = vmul.f32 0.2, %v1034_v42  ;;  %v1158_v60 = vmax.f32 %v1030_v24, %v1094_v27  ;;  %v1218_v5 = vpack.c.bf16 %v1154_v48, %v1154_v48 }
 0x24f   :  { %1276 = vst.msk [vmem:[%s3036_s3 + $0x34] sm:$0xf] %vm1262_vm6, %v1211_v28  ;;  %v1099_v7 = vmul.f32 0.2, %v1035_v49  ;;  %v1159_v36 = vmax.f32 %v1031_v37, %v1095_v18  ;;  %v1219_v62 = vpack.c.bf16 %v1155_v26, %v1155_v26  ;;  %v1040_v20 = vadd.f32 %v2413_v1, %v2542_v31 }
 0x250   :  { %1277 = vst.msk [vmem:[%s3036_s3 + $0x38] sm:$0xf] %vm1262_vm6, %v1212_v46  ;;  %v1100_v0 = vmul.f32 0.2, %v1036_v52  ;;  %v1160_v56 = vmax.f32 %v1032_v13, %v1096_v22  ;;  %v1220_v10 = vpack.c.bf16 %v1156_v6, %v1156_v6  ;;  %v1101_v2 = vmul.f32 0.2, %v1037_v55 }
 0x251   :  { %1278 = vst.msk [vmem:[%s3036_s3 + $0x3c] sm:$0xf] %vm1262_vm6, %v1213_v33  ;;  %v1161_v19 = vmax.f32 %v1033_v35, %v1097_v57  ;;  %v1221_v61 = vpack.c.bf16 %v1157_v47, %v1157_v47  ;;  %v1042_v31 = vadd.f32 %v2413_v1, %v2550_v30  ;;  %v1102_v44 = vmul.f32 0.2, %v1038_v58 }
 0x252   :  { %1279 = vst.msk [vmem:[%s3036_s3 + $0x40] sm:$0xf] %vm1262_vm6, %v1214_v51  ;;  %v1162_v12 = vmax.f32 %v1034_v42, %v1098_v43  ;;  %v1222_v11 = vpack.c.bf16 %v1158_v60, %v1158_v60  ;;  %v1103_v39 = vmul.f32 0.2, %v1039_v16  ;;  %v1163_v29 = vmax.f32 %v1035_v49, %v1099_v7  ;;  %v3167_v7 = vld [vmem:[#allocation10_spill] sm:$0xff] }
 0x253   :  { %1280 = vst.msk [vmem:[%s3036_s3 + $0x44] sm:$0xf] %vm1262_vm6, %v1215_v54  ;;  %v1223_v24 = vpack.c.bf16 %v1159_v36, %v1159_v36  ;;  %v1044_v30 = vadd.f32 %v2413_v1, %v2558_v38  ;;  %v1104_v25 = vmul.f32 0.2, %v1040_v20  ;;  %v1164_v9 = vmax.f32 %v1036_v52, %v1100_v0 }
 0x254   :  { %1281 = vst.msk [vmem:[%s3036_s3 + $0x48] sm:$0xf] %vm1262_vm6, %v1216_v59  ;;  %v1224_v15 = vpack.c.bf16 %v1160_v56, %v1160_v56  ;;  %v1105_v37 = vmul.f32 0.2, %v1041_v17  ;;  %v1165_v4 = vmax.f32 %v1037_v55, %v1101_v2  ;;  %v1225_v34 = vpack.c.bf16 %v1161_v19, %v1161_v19  ;;  %v3165_v59 = vld [vmem:[#allocation7_spill] sm:$0xff]  ;;  %v3168_v56 = vld [vmem:[#allocation2_spill] sm:$0xff] }
 0x255   :  { %1282 = vst.msk [vmem:[%s3036_s3 + $0x4c] sm:$0xf] %vm1262_vm6, %v1217_v8  ;;  %v1046_v38 = vadd.f32 %v2413_v1, %v2566_v50  ;;  %v1106_v28 = vmul.f32 0.2, %v1042_v31  ;;  %v1166_v13 = vmax.f32 %v1038_v58, %v1102_v44  ;;  %v1226_v40 = vpack.c.bf16 %v1162_v12, %v1162_v12  ;;  %v3166_v58 = vld [vmem:[#allocation8_spill] sm:$0xff] }
 0x256   :  { %1283 = vst.msk [vmem:[%s3036_s3 + $0x50] sm:$0xf] %vm1262_vm6, %v1218_v5  ;;  %v1107_v53 = vmul.f32 0.2, %v1043_v14  ;;  %v1167_v46 = vmax.f32 %v1039_v16, %v1103_v39  ;;  %v1227_v35 = vpack.c.bf16 %v1163_v29, %v1163_v29  ;;  %v1048_v50 = vadd.f32 %v2413_v1, %v2574_v63  ;;  %v3163_v63 = vld [vmem:[#allocation16_spill] sm:$0xff] }
 0x257   :  { %1284 = vst.msk [vmem:[%s3036_s3 + $0x54] sm:$0xf] %vm1262_vm6, %v1219_v62  ;;  %v1108_v23 = vmul.f32 0.2, %v1044_v30  ;;  %v1168_v41 = vmax.f32 %v1040_v20, %v1104_v25  ;;  %v1228_v33 = vpack.c.bf16 %v1164_v9, %v1164_v9  ;;  %v1109_v42 = vmul.f32 0.2, %v1045_v21 }
 0x258   :  { %1285 = vst.msk [vmem:[%s3036_s3 + $0x58] sm:$0xf] %vm1262_vm6, %v1220_v10  ;;  %v1169_v27 = vmax.f32 %v1041_v17, %v1105_v37  ;;  %v1229_v48 = vpack.c.bf16 %v1165_v4, %v1165_v4  ;;  %v1050_v51 = vadd.f32 %v2413_v1, %v3163_v63  ;;  %v1110_v49 = vmul.f32 0.2, %v1046_v38  ;;  %v3171_v25 = vld [vmem:[#allocation6_spill] sm:$0xff]  ;;  %v3172_v4 = vld [vmem:[#allocation11_spill] sm:$0xff] }
 0x259   :  { %1286 = vst.msk [vmem:[%s3036_s3 + $0x5c] sm:$0xf] %vm1262_vm6, %v1221_v61  ;;  %v1170_v18 = vmax.f32 %v1042_v31, %v1106_v28  ;;  %v1230_v26 = vpack.c.bf16 %v1166_v13, %v1166_v13  ;;  %v1051_v54 = vadd.f32 %v2413_v1, %v3164_v3  ;;  %v1111_v52 = vmul.f32 0.2, %v1047_v45  ;;  %v3169_v61 = vld [vmem:[#allocation3_spill] sm:$0xff] }
 0x25a   :  { %1287 = vst.msk [vmem:[%s3036_s3 + $0x60] sm:$0xf] %vm1262_vm6, %v1222_v11  ;;  %v1171_v22 = vmax.f32 %v1043_v14, %v1107_v53  ;;  %v1231_v6 = vpack.c.bf16 %v1167_v46, %v1167_v46  ;;  %v1052_v55 = vadd.f32 %v2413_v1, %v3165_v59  ;;  %v1112_v57 = vmul.f32 0.2, %v1048_v50  ;;  %v3170_v14 = vld [vmem:[#allocation5_spill] sm:$0xff] }
 0x25b   :  { %1288 = vst.msk [vmem:[%s3036_s3 + $0x64] sm:$0xf] %vm1262_vm6, %v1223_v24  ;;  %v1172_v47 = vmax.f32 %v1044_v30, %v1108_v23  ;;  %v1232_v8 = vpack.c.bf16 %v1168_v41, %v1168_v41  ;;  %v1053_v43 = vadd.f32 %v2413_v1, %v3166_v58  ;;  %v1113_v60 = vmul.f32 0.2, %v1049_v32 }
 0x25c   :  { %1289 = vst.msk [vmem:[%s3036_s3 + $0x68] sm:$0xf] %vm1262_vm6, %v1224_v15  ;;  %v1173_v5 = vmax.f32 %v1045_v21, %v1109_v42  ;;  %v1233_v16 = vpack.c.bf16 %v1169_v27, %v1169_v27  ;;  %v1054_v36 = vadd.f32 %v2413_v1, %v3167_v7  ;;  %v1114_v62 = vmul.f32 0.2, %v1050_v51  ;;  %v3175_v42 = vld [vmem:[#allocation19_spill] sm:$0xff] }
 0x25d   :  { %1290 = vst.msk [vmem:[%s3036_s3 + $0x6c] sm:$0xf] %vm1262_vm6, %v1225_v34  ;;  %v1174_v20 = vmax.f32 %v1046_v38, %v1110_v49  ;;  %v1234_v0 = vpack.c.bf16 %v1170_v18, %v1170_v18  ;;  %v1055_v10 = vadd.f32 %v2413_v1, %v3168_v56  ;;  %v1115_v17 = vmul.f32 0.2, %v1051_v54  ;;  %v3176_v49 = vld [vmem:[#allocation9_spill] sm:$0xff] }
 0x25e   :  { %1291 = vst.msk [vmem:[%s3036_s3 + $0x70] sm:$0xf] %vm1262_vm6, %v1226_v40  ;;  %v1175_v2 = vmax.f32 %v1047_v45, %v1111_v52  ;;  %v1235_v19 = vpack.c.bf16 %v1171_v22, %v1171_v22  ;;  %v1056_v31 = vadd.f32 %v2413_v1, %v3169_v61  ;;  %v1116_v44 = vmul.f32 0.2, %v1052_v55  ;;  %v3173_v40 = vld [vmem:[#allocation4_spill] sm:$0xff] }
 0x25f   :  { %1292 = vst.msk [vmem:[%s3036_s3 + $0x74] sm:$0xf] %vm1262_vm6, %v1227_v35  ;;  %v1176_v12 = vmax.f32 %v1048_v50, %v1112_v57  ;;  %v1236_v11 = vpack.c.bf16 %v1172_v47, %v1172_v47  ;;  %v1057_v39 = vadd.f32 %v2413_v1, %v3170_v14  ;;  %v1117_v29 = vmul.f32 0.2, %v1053_v43  ;;  %v3174_v50 = vld [vmem:[#allocation18_spill] sm:$0xff]  ;;  %v3177_v52 = vld [vmem:[#allocation20_spill] sm:$0xff] }
 0x260   :  { %1293 = vst.msk [vmem:[%s3036_s3 + $0x78] sm:$0xf] %vm1262_vm6, %v1228_v33  ;;  %v1177_v24 = vmax.f32 %v1049_v32, %v1113_v60  ;;  %v1237_v30 = vpack.c.bf16 %v1173_v5, %v1173_v5  ;;  %v1058_v9 = vadd.f32 %v2413_v1, %v3171_v25  ;;  %v1118_v15 = vmul.f32 0.2, %v1054_v36  ;;  %v3178_v57 = vld [vmem:[#allocation12_spill] sm:$0xff]  ;;  %v3179_v60 = vld [vmem:[#allocation13_spill] sm:$0xff] }
 0x261   :  { %1294 = vst.msk [vmem:[%s3036_s3 + $0x7c] sm:$0xf] %vm1262_vm6, %v1229_v48  ;;  %v1178_v21 = vmax.f32 %v1050_v51, %v1114_v62  ;;  %v1238_v37 = vpack.c.bf16 %v1174_v20, %v1174_v20  ;;  %v1059_v34 = vadd.f32 %v2413_v1, %v3172_v4  ;;  %v1119_v38 = vmul.f32 0.2, %v1055_v10  ;;  %v3180_v62 = vld [vmem:[#allocation14_spill] sm:$0xff] }
 0x262   :  { %1295 = vst.msk [vmem:[%s3036_s3 + $0x80] sm:$0xf] %vm1262_vm6, %v1230_v26  ;;  %v1179_v28 = vmax.f32 %v1051_v54, %v1115_v17  ;;  %v1239_v13 = vpack.c.bf16 %v1175_v2, %v1175_v2  ;;  %v1060_v45 = vadd.f32 %v2413_v1, %v3173_v40  ;;  %v1120_v53 = vmul.f32 0.2, %v1056_v31  ;;  %v3181_v17 = vld [vmem:[#allocation15_spill] sm:$0xff] }
 0x263   :  { %1296 = vst.msk [vmem:[%s3036_s3 + $0x84] sm:$0xf] %vm1262_vm6, %v1231_v6  ;;  %v1180_v46 = vmax.f32 %v1052_v55, %v1116_v44  ;;  %v1240_v35 = vpack.c.bf16 %v1176_v12, %v1176_v12  ;;  %v1061_v23 = vadd.f32 %v2413_v1, %v3174_v50  ;;  %v1121_v41 = vmul.f32 0.2, %v1057_v39 }
 0x264   :  { %1297 = vst.msk [vmem:[%s3036_s3 + $0x88] sm:$0xf] %vm1262_vm6, %v1232_v8  ;;  %v1181_v33 = vmax.f32 %v1053_v43, %v1117_v29  ;;  %v1241_v32 = vpack.c.bf16 %v1177_v24, %v1177_v24  ;;  %v1062_v27 = vadd.f32 %v2413_v1, %v3175_v42  ;;  %v1122_v48 = vmul.f32 0.2, %v1058_v9 }
 0x265   :  { %1298 = vst.msk [vmem:[%s3036_s3 + $0x8c] sm:$0xf] %vm1262_vm6, %v1233_v16  ;;  %v1182_v63 = vmax.f32 %v1054_v36, %v1118_v15  ;;  %v1242_v51 = vpack.c.bf16 %v1178_v21, %v1178_v21  ;;  %v1063_v18 = vadd.f32 %v2413_v1, %v3176_v49  ;;  %v1123_v26 = vmul.f32 0.2, %v1059_v34  ;;  %v3182_v21 = vld [vmem:[#allocation23_spill] sm:$0xff] }
 0x266   :  { %1299 = vst.msk [vmem:[%s3036_s3 + $0x90] sm:$0xf] %vm1262_vm6, %v1234_v0  ;;  %v1183_v3 = vmax.f32 %v1055_v10, %v1119_v38  ;;  %v1243_v54 = vpack.c.bf16 %v1179_v28, %v1179_v28  ;;  %v1064_v22 = vadd.f32 %v2413_v1, %v3177_v52  ;;  %v1124_v6 = vmul.f32 0.2, %v1060_v45 }
 0x267   :  { %1300 = vst.msk [vmem:[%s3036_s3 + $0x94] sm:$0xf] %vm1262_vm6, %v1235_v19  ;;  %v1184_v59 = vmax.f32 %v1056_v31, %v1120_v53  ;;  %v1244_v55 = vpack.c.bf16 %v1180_v46, %v1180_v46  ;;  %v1065_v47 = vadd.f32 %v2413_v1, %v3178_v57  ;;  %v1125_v8 = vmul.f32 0.2, %v1061_v23 }
 0x268   :  { %1301 = vst.msk [vmem:[%s3036_s3 + $0x98] sm:$0xf] %vm1262_vm6, %v1236_v11  ;;  %v1185_v58 = vmax.f32 %v1057_v39, %v1121_v41  ;;  %v1245_v43 = vpack.c.bf16 %v1181_v33, %v1181_v33  ;;  %v1066_v5 = vadd.f32 %v2413_v1, %v3179_v60  ;;  %v1126_v16 = vmul.f32 0.2, %v1062_v27 }
 0x269   :  { %1302 = vst.msk [vmem:[%s3036_s3 + $0x9c] sm:$0xf] %vm1262_vm6, %v1237_v30  ;;  %v1186_v7 = vmax.f32 %v1058_v9, %v1122_v48  ;;  %v1246_v36 = vpack.c.bf16 %v1182_v63, %v1182_v63  ;;  %v1067_v20 = vadd.f32 %v2413_v1, %v3180_v62  ;;  %v1127_v0 = vmul.f32 0.2, %v1063_v18 }
 0x26a   :  { %1303 = vst.msk [vmem:[%s3036_s3 + $0xa0] sm:$0xf] %vm1262_vm6, %v1238_v37  ;;  %v1187_v56 = vmax.f32 %v1059_v34, %v1123_v26  ;;  %v1247_v10 = vpack.c.bf16 %v1183_v3, %v1183_v3  ;;  %v1068_v2 = vadd.f32 %v2413_v1, %v3181_v17  ;;  %v1128_v19 = vmul.f32 0.2, %v1064_v22 }
 0x26b   :  { %1304 = vst.msk [vmem:[%s3036_s3 + $0xa4] sm:$0xf] %vm1262_vm6, %v1239_v13  ;;  %v1188_v61 = vmax.f32 %v1060_v45, %v1124_v6  ;;  %v1248_v31 = vpack.c.bf16 %v1184_v59, %v1184_v59  ;;  %v1129_v44 = vmul.f32 0.2, %v1065_v47  ;;  %v1189_v12 = vmax.f32 %v1061_v23, %v1125_v8 }
 0x26c   :  { %1305 = vst.msk [vmem:[%s3036_s3 + $0xa8] sm:$0xf] %vm1262_vm6, %v1240_v35  ;;  %v1249_v11 = vpack.c.bf16 %v1185_v58, %v1185_v58  ;;  %v1130_v14 = vmul.f32 0.2, %v1066_v5  ;;  %v1190_v39 = vmax.f32 %v1062_v27, %v1126_v16  ;;  %v1250_v29 = vpack.c.bf16 %v1186_v7, %v1186_v7 }
 0x26d   :  { %1306 = vst.msk [vmem:[%s3036_s3 + $0xac] sm:$0xf] %vm1262_vm6, %v1241_v32  ;;  %v1131_v1 = vmul.f32 0.2, %v1067_v20  ;;  %v1191_v24 = vmax.f32 %v1063_v18, %v1127_v0  ;;  %v1251_v30 = vpack.c.bf16 %v1187_v56, %v1187_v56  ;;  %v1132_v25 = vmul.f32 0.2, %v1068_v2 }
 0x26e   :  { %1307 = vst.msk [vmem:[%s3036_s3 + $0xb0] sm:$0xf] %vm1262_vm6, %v1242_v51  ;;  %v1192_v9 = vmax.f32 %v1064_v22, %v1128_v19  ;;  %v1252_v15 = vpack.c.bf16 %v1188_v61, %v1188_v61  ;;  %v1133_v37 = vmul.f32 0.2, %v3182_v21  ;;  %v1193_v4 = vmax.f32 %v1065_v47, %v1129_v44 }
 0x26f   :  { %1308 = vst.msk [vmem:[%s3036_s3 + $0xb4] sm:$0xf] %vm1262_vm6, %v1243_v54  ;;  %v1253_v34 = vpack.c.bf16 %v1189_v12, %v1189_v12  ;;  %v1194_v38 = vmax.f32 %v1066_v5, %v1130_v14  ;;  %v1254_v28 = vpack.c.bf16 %v1190_v39, %v1190_v39  ;;  %v1195_v13 = vmax.f32 %v1067_v20, %v1131_v1 }
 0x270   :  { %1309 = vst.msk [vmem:[%s3036_s3 + $0xb8] sm:$0xf] %vm1262_vm6, %v1244_v55  ;;  %v1255_v40 = vpack.c.bf16 %v1191_v24, %v1191_v24  ;;  %v1196_v45 = vmax.f32 %v1068_v2, %v1132_v25  ;;  %v1256_v53 = vpack.c.bf16 %v1192_v9, %v1192_v9  ;;  %v1197_v46 = vmax.f32 %v3182_v21, %v1133_v37 }
 0x271   :  { %1310 = vst.msk [vmem:[%s3036_s3 + $0xbc] sm:$0xf] %vm1262_vm6, %v1245_v43  ;;  %v1257_v35 = vpack.c.bf16 %v1193_v4, %v1193_v4  ;;  %v1258_v50 = vpack.c.bf16 %v1194_v38, %v1194_v38  ;;  %v1259_v23 = vpack.c.bf16 %v1195_v13, %v1195_v13 }
 0x272   :  { %1311 = vst.msk [vmem:[%s3036_s3 + $0xc0] sm:$0xf] %vm1262_vm6, %v1246_v36  ;;  %v1260_v41 = vpack.c.bf16 %v1196_v45, %v1196_v45  ;;  %v1261_v33 = vpack.c.bf16 %v1197_v46, %v1197_v46 }
 0x273   :  { %1312 = vst.msk [vmem:[%s3036_s3 + $0xc4] sm:$0xf] %vm1262_vm6, %v1247_v10 }
 0x274   :  { %1313 = vst.msk [vmem:[%s3036_s3 + $0xc8] sm:$0xf] %vm1262_vm6, %v1248_v31 }
 0x275   :  { %1314 = vst.msk [vmem:[%s3036_s3 + $0xcc] sm:$0xf] %vm1262_vm6, %v1249_v11 }
 0x276   :  { %1315 = vst.msk [vmem:[%s3036_s3 + $0xd0] sm:$0xf] %vm1262_vm6, %v1250_v29 }
 0x277   :  { %1316 = vst.msk [vmem:[%s3036_s3 + $0xd4] sm:$0xf] %vm1262_vm6, %v1251_v30 }
 0x278   :  { %1317 = vst.msk [vmem:[%s3036_s3 + $0xd8] sm:$0xf] %vm1262_vm6, %v1252_v15 }
 0x279   :  { %1318 = vst.msk [vmem:[%s3036_s3 + $0xdc] sm:$0xf] %vm1262_vm6, %v1253_v34 }
 0x27a   :  { %1319 = vst.msk [vmem:[%s3036_s3 + $0xe0] sm:$0xf] %vm1262_vm6, %v1254_v28 }
 0x27b   :  { %1320 = vst.msk [vmem:[%s3036_s3 + $0xe4] sm:$0xf] %vm1262_vm6, %v1255_v40 }
 0x27c   :  { %1321 = vst.msk [vmem:[%s3036_s3 + $0xe8] sm:$0xf] %vm1262_vm6, %v1256_v53 }
 0x27d   :  { %1322 = vst.msk [vmem:[%s3036_s3 + $0xec] sm:$0xf] %vm1262_vm6, %v1257_v35 }
 0x27e   :  { %1323 = vst.msk [vmem:[%s3036_s3 + $0xf0] sm:$0xf] %vm1262_vm6, %v1258_v50 }
 0x27f   :  { %1324 = vst.msk [vmem:[%s3036_s3 + $0xf4] sm:$0xf] %vm1262_vm6, %v1259_v23 }
 0x280   :  { %1325 = vst.msk [vmem:[%s3036_s3 + $0xf8] sm:$0xf] %vm1262_vm6, %v1260_v41 }
 0x281   :  { %1326 = vst.msk [vmem:[%s3036_s3 + $0xfc] sm:$0xf] %vm1262_vm6, %v1261_v33 }

</bundles_post_ra>
